<compile_context>
chip_gen: v7x
topology: tpu7x:2x2x1
jax: 0.10.0
libtpu: 0.0.40
codegen_flags: <defaults>
</compile_context>

<pallas_src>
import jax
import jax.numpy as jnp
from jax.experimental import pallas as pl
from jax.experimental.pallas import tpu as pltpu

INPUT_DIM = 784
HIDDEN_DIM = 400
LATENT_DIM = 20


def vae_kernel(x_ref, w1_ref, b1_ref, wmv_ref, bmv_ref,
               w2_ref, b2_ref, w3_ref, b3_ref, eps_ref,
               recon_ref, mulv_ref):
    # encoder: Linear(input_dim, hidden_dim) + ReLU  (bf16 operands, f32 acc)
    x = x_ref[...].astype(jnp.bfloat16)
    h = jnp.dot(x, w1_ref[...], preferred_element_type=jnp.float32) + b1_ref[...]
    h = jnp.maximum(h, 0.0)

    # fused fc_mu / fc_var: single [HIDDEN, 2*LATENT] projection
    mv = jnp.dot(h.astype(jnp.bfloat16), wmv_ref[...],
                 preferred_element_type=jnp.float32) + bmv_ref[...]
    mu = mv[:, :LATENT_DIM]
    log_var = mv[:, LATENT_DIM:]

    # reparameterize: z = mu + eps * exp(0.5 * log_var)   (f32 elementwise)
    z = mu + eps_ref[...] * jnp.exp(0.5 * log_var)

    # decoder: Linear(latent, hidden) + ReLU
    h2 = jnp.dot(z.astype(jnp.bfloat16), w2_ref[...],
                 preferred_element_type=jnp.float32) + b2_ref[...]
    h2 = jnp.maximum(h2, 0.0)

    # decoder: Linear(hidden, input) + Sigmoid (EUP exp + EUP approx recip)
    logits = jnp.dot(h2.astype(jnp.bfloat16), w3_ref[...],
                     preferred_element_type=jnp.float32) + b3_ref[...]
    recon_ref[...] = pl.reciprocal(1.0 + jnp.exp(-logits), approx=True)

    # lane-dense packed latent output [TB, 2*LATENT]; split in the wrapper
    mulv_ref[...] = mv


def vae_forward(x, params, eps, *, batch_tile=256):
    """x: [B, INPUT_DIM] f32, eps: [B, LATENT_DIM] f32 reparameterization noise.

    Returns (reconstruction [B, INPUT_DIM], mu [B, LATENT], log_var [B, LATENT]).
    """
    B = x.shape[0]
    TB = min(batch_tile, B)
    if TB != B and TB % 8 != 0:          # sublane alignment for batch tiles
        TB = max(8, (TB // 8) * 8)
    Bp = ((B + TB - 1) // TB) * TB
    if Bp != B:
        x = jnp.pad(x, ((0, Bp - B), (0, 0)))
        eps = jnp.pad(eps, ((0, Bp - B), (0, 0)))

    batch_map = lambda i: (i, 0)
    const_map = lambda i: (0, 0)         # weights resident across all tiles

    in_specs = [
        pl.BlockSpec((TB, INPUT_DIM), batch_map),                 # x
        pl.BlockSpec((INPUT_DIM, HIDDEN_DIM), const_map),         # w1 (bf16)
        pl.BlockSpec((1, HIDDEN_DIM), const_map),                 # b1
        pl.BlockSpec((HIDDEN_DIM, 2 * LATENT_DIM), const_map),    # wmv (bf16)
        pl.BlockSpec((1, 2 * LATENT_DIM), const_map),             # bmv
        pl.BlockSpec((LATENT_DIM, HIDDEN_DIM), const_map),        # w2 (bf16)
        pl.BlockSpec((1, HIDDEN_DIM), const_map),                 # b2
        pl.BlockSpec((HIDDEN_DIM, INPUT_DIM), const_map),         # w3 (bf16)
        pl.BlockSpec((1, INPUT_DIM), const_map),                  # b3
        pl.BlockSpec((TB, LATENT_DIM), batch_map),                # eps
    ]
    out_specs = (
        pl.BlockSpec((TB, INPUT_DIM), batch_map),                 # recon
        pl.BlockSpec((TB, 2 * LATENT_DIM), batch_map),            # packed mu|logvar
    )
    out_shape = (
        jax.ShapeDtypeStruct((Bp, INPUT_DIM), jnp.float32),
        jax.ShapeDtypeStruct((Bp, 2 * LATENT_DIM), jnp.float32),
    )

    recon, mulv = pl.pallas_call(
        vae_kernel,
        out_shape=out_shape,
        grid=(Bp // TB,),
        in_specs=in_specs,
        out_specs=out_specs,
        compiler_params=pltpu.CompilerParams(
            dimension_semantics=("parallel",)),
    )(
        x,
        params["w1"], params["b1"],
        params["wmv"], params["bmv"],
        params["w2"], params["b2"],
        params["w3"], params["b3"],
        eps,
    )

    recon = recon[:B]
    mu = mulv[:B, :LATENT_DIM]
    log_var = mulv[:B, LATENT_DIM:]
    return recon, mu, log_var


def init_params(key):
    """PyTorch-style nn.Linear init: U(-1/sqrt(fan_in), +1/sqrt(fan_in)).

    Weights are stored [in, out] in bf16 (MXU-native); biases stay f32.
    fc_mu / fc_var are fused into one [HIDDEN, 2*LATENT] weight + bias.
    """
    def linear(k, fan_in, fan_out):
        kw, kb = jax.random.split(k)
        bound = 1.0 / jnp.sqrt(fan_in)
        w = jax.random.uniform(kw, (fan_in, fan_out), jnp.float32, -bound, bound)
        b = jax.random.uniform(kb, (1, fan_out), jnp.float32, -bound, bound)
        return w.astype(jnp.bfloat16), b

    k1, k2, k3, k4, k5 = jax.random.split(key, 5)
    w1, b1 = linear(k1, INPUT_DIM, HIDDEN_DIM)
    wmu, bmu = linear(k2, HIDDEN_DIM, LATENT_DIM)
    wvar, bvar = linear(k3, HIDDEN_DIM, LATENT_DIM)
    w2, b2 = linear(k4, LATENT_DIM, HIDDEN_DIM)
    w3, b3 = linear(k5, HIDDEN_DIM, INPUT_DIM)
    return dict(
        w1=w1, b1=b1,
        wmv=jnp.concatenate([wmu, wvar], axis=1),     # [HIDDEN, 2*LATENT] bf16
        bmv=jnp.concatenate([bmu, bvar], axis=1),     # [1, 2*LATENT] f32
        w2=w2, b2=b2, w3=w3, b3=b3,
    )


def vae_reference(x, params, eps):
    """Pure-JAX reference using the same bf16-operand / f32-accumulate dots."""
    def dot(a, w):
        return jnp.dot(a.astype(jnp.bfloat16), w, preferred_element_type=jnp.float32)

    h = jax.nn.relu(dot(x, params["w1"]) + params["b1"])
    mv = dot(h, params["wmv"]) + params["bmv"]
    mu, log_var = mv[:, :LATENT_DIM], mv[:, LATENT_DIM:]
    z = mu + eps * jnp.exp(0.5 * log_var)
    h2 = jax.nn.relu(dot(z, params["w2"]) + params["b2"])
    recon = jax.nn.sigmoid(dot(h2, params["w3"]) + params["b3"])
    return recon, mu, log_var


if __name__ == "__main__":
    key = jax.random.PRNGKey(0)
    kp, kx, ke = jax.random.split(key, 3)

    B = 8  # small batch
    params = init_params(kp)
    x = jax.random.uniform(kx, (B, INPUT_DIM), jnp.float32)      # MNIST-like inputs in [0,1)
    eps = jax.random.normal(ke, (B, LATENT_DIM), jnp.float32)    # reparameterization noise

    recon, mu, log_var = jax.block_until_ready(vae_forward(x, params, eps))

    # sanity check against the pure-JAX reference (same bf16 dot operands;
    # tolerance covers MXU accumulation order + approx-reciprocal sigmoid)
    r_ref, mu_ref, lv_ref = vae_reference(x, params, eps)
    assert recon.shape == (B, INPUT_DIM)
    assert mu.shape == (B, LATENT_DIM) and log_var.shape == (B, LATENT_DIM)
    assert jnp.allclose(recon, r_ref, atol=1e-2)
    assert jnp.allclose(mu, mu_ref, atol=1e-2)
    assert jnp.allclose(log_var, lv_ref, atol=1e-2)

    print("KERNEL_OK")
</pallas_src>

<mosaic_0001>
module attributes {stable_mosaic.version = 11 : i64} {
  func.func @vae_kernel(%arg0: i32, %arg1: memref<8x784xf32, #tpu.memory_space<vmem>>, %arg2: memref<784x400xbf16, #tpu.memory_space<vmem>>, %arg3: memref<1x400xf32, #tpu.memory_space<vmem>>, %arg4: memref<400x40xbf16, #tpu.memory_space<vmem>>, %arg5: memref<1x40xf32, #tpu.memory_space<vmem>>, %arg6: memref<20x400xbf16, #tpu.memory_space<vmem>>, %arg7: memref<1x400xf32, #tpu.memory_space<vmem>>, %arg8: memref<400x784xbf16, #tpu.memory_space<vmem>>, %arg9: memref<1x784xf32, #tpu.memory_space<vmem>>, %arg10: memref<8x20xf32, #tpu.memory_space<vmem>>, %arg11: memref<8x784xf32, #tpu.memory_space<vmem>>, %arg12: memref<8x40xf32, #tpu.memory_space<vmem>>) attributes {dimension_semantics = [#tpu.dimension_semantics<parallel>], iteration_bounds = array<i64: 1>, scalar_prefetch = 0 : i64, scratch_operands = 0 : i64, tpu.core_type = #tpu.core_type<tc>, window_params = [{transform_indices = @transform_0, window_bounds = array<i64: 8, 784>}, {pipeline_mode = #tpu.pipeline_mode<synchronous>, transform_indices = @transform_1, window_bounds = array<i64: 784, 400>}, {pipeline_mode = #tpu.pipeline_mode<synchronous>, transform_indices = @transform_2, window_bounds = array<i64: 1, 400>}, {pipeline_mode = #tpu.pipeline_mode<synchronous>, transform_indices = @transform_3, window_bounds = array<i64: 400, 40>}, {pipeline_mode = #tpu.pipeline_mode<synchronous>, transform_indices = @transform_4, window_bounds = array<i64: 1, 40>}, {pipeline_mode = #tpu.pipeline_mode<synchronous>, transform_indices = @transform_5, window_bounds = array<i64: 20, 400>}, {pipeline_mode = #tpu.pipeline_mode<synchronous>, transform_indices = @transform_6, window_bounds = array<i64: 1, 400>}, {pipeline_mode = #tpu.pipeline_mode<synchronous>, transform_indices = @transform_7, window_bounds = array<i64: 400, 784>}, {pipeline_mode = #tpu.pipeline_mode<synchronous>, transform_indices = @transform_8, window_bounds = array<i64: 1, 784>}, {transform_indices = @transform_9, window_bounds = array<i64: 8, 20>}, {transform_indices = @transform_10, window_bounds = array<i64: 8, 784>}, {transform_indices = @transform_11, window_bounds = array<i64: 8, 40>}]} {
    %c0 = arith.constant 0 : index
    %c0_0 = arith.constant 0 : index
    %0 = vector.load %arg1[%c0, %c0_0] : memref<8x784xf32, #tpu.memory_space<vmem>>, vector<8x784xf32>
    %1 = arith.truncf %0 : vector<8x784xf32> to vector<8x784xbf16>
    %c0_1 = arith.constant 0 : index
    %c0_2 = arith.constant 0 : index
    %2 = vector.load %arg2[%c0_1, %c0_2] : memref<784x400xbf16, #tpu.memory_space<vmem>>, vector<784x400xbf16>
    %cst = arith.constant dense<0.000000e+00> : vector<8x400xf32>
    %3 = tpu.matmul %1, %2, %cst {dimension_numbers = #tpu.dot_dimension_numbers<[1], [0], [0], [1], [0, 0, 1, 1], [], []>} : vector<8x784xbf16>, vector<784x400xbf16>, vector<8x400xf32> -> vector<8x400xf32>
    %c0_3 = arith.constant 0 : index
    %c0_4 = arith.constant 0 : index
    %4 = vector.load %arg3[%c0_3, %c0_4] : memref<1x400xf32, #tpu.memory_space<vmem>>, vector<1x400xf32>
    %5 = vector.broadcast %4 : vector<1x400xf32> to vector<8x400xf32>
    %6 = arith.addf %3, %5 : vector<8x400xf32>
    %cst_5 = arith.constant 0.000000e+00 : f32
    %7 = vector.broadcast %cst_5 : f32 to vector<8x400xf32>
    %8 = arith.maximumf %6, %7 : vector<8x400xf32>
    %9 = arith.truncf %8 : vector<8x400xf32> to vector<8x400xbf16>
    %c0_6 = arith.constant 0 : index
    %c0_7 = arith.constant 0 : index
    %10 = vector.load %arg4[%c0_6, %c0_7] : memref<400x40xbf16, #tpu.memory_space<vmem>>, vector<400x40xbf16>
    %cst_8 = arith.constant dense<0.000000e+00> : vector<8x40xf32>
    %11 = tpu.matmul %9, %10, %cst_8 {dimension_numbers = #tpu.dot_dimension_numbers<[1], [0], [0], [1], [0, 0, 1, 1], [], []>} : vector<8x400xbf16>, vector<400x40xbf16>, vector<8x40xf32> -> vector<8x40xf32>
    %c0_9 = arith.constant 0 : index
    %c0_10 = arith.constant 0 : index
    %12 = vector.load %arg5[%c0_9, %c0_10] : memref<1x40xf32, #tpu.memory_space<vmem>>, vector<1x40xf32>
    %13 = vector.broadcast %12 : vector<1x40xf32> to vector<8x40xf32>
    %14 = arith.addf %11, %13 : vector<8x40xf32>
    %15 = vector.extract_strided_slice %14 {offsets = [0, 0], sizes = [8, 20], strides = [1, 1]} : vector<8x40xf32> to vector<8x20xf32>
    %16 = vector.extract_strided_slice %14 {offsets = [0, 20], sizes = [8, 20], strides = [1, 1]} : vector<8x40xf32> to vector<8x20xf32>
    %c0_11 = arith.constant 0 : index
    %c0_12 = arith.constant 0 : index
    %17 = vector.load %arg10[%c0_11, %c0_12] : memref<8x20xf32, #tpu.memory_space<vmem>>, vector<8x20xf32>
    %cst_13 = arith.constant 5.000000e-01 : f32
    %18 = vector.broadcast %cst_13 : f32 to vector<8x20xf32>
    %19 = arith.mulf %18, %16 : vector<8x20xf32>
    %20 = math.exp %19 : vector<8x20xf32>
    %21 = arith.mulf %17, %20 : vector<8x20xf32>
    %22 = arith.addf %15, %21 : vector<8x20xf32>
    %23 = arith.truncf %22 : vector<8x20xf32> to vector<8x20xbf16>
    %c0_14 = arith.constant 0 : index
    %c0_15 = arith.constant 0 : index
    %24 = vector.load %arg6[%c0_14, %c0_15] : memref<20x400xbf16, #tpu.memory_space<vmem>>, vector<20x400xbf16>
    %cst_16 = arith.constant dense<0.000000e+00> : vector<8x400xf32>
    %25 = tpu.matmul %23, %24, %cst_16 {dimension_numbers = #tpu.dot_dimension_numbers<[1], [0], [0], [1], [0, 0, 1, 1], [], []>} : vector<8x20xbf16>, vector<20x400xbf16>, vector<8x400xf32> -> vector<8x400xf32>
    %c0_17 = arith.constant 0 : index
    %c0_18 = arith.constant 0 : index
    %26 = vector.load %arg7[%c0_17, %c0_18] : memref<1x400xf32, #tpu.memory_space<vmem>>, vector<1x400xf32>
    %27 = vector.broadcast %26 : vector<1x400xf32> to vector<8x400xf32>
    %28 = arith.addf %25, %27 : vector<8x400xf32>
    %cst_19 = arith.constant 0.000000e+00 : f32
    %29 = vector.broadcast %cst_19 : f32 to vector<8x400xf32>
    %30 = arith.maximumf %28, %29 : vector<8x400xf32>
    %31 = arith.truncf %30 : vector<8x400xf32> to vector<8x400xbf16>
    %c0_20 = arith.constant 0 : index
    %c0_21 = arith.constant 0 : index
    %32 = vector.load %arg8[%c0_20, %c0_21] : memref<400x784xbf16, #tpu.memory_space<vmem>>, vector<400x784xbf16>
    %cst_22 = arith.constant dense<0.000000e+00> : vector<8x784xf32>
    %33 = tpu.matmul %31, %32, %cst_22 {dimension_numbers = #tpu.dot_dimension_numbers<[1], [0], [0], [1], [0, 0, 1, 1], [], []>} : vector<8x400xbf16>, vector<400x784xbf16>, vector<8x784xf32> -> vector<8x784xf32>
    %c0_23 = arith.constant 0 : index
    %c0_24 = arith.constant 0 : index
    %34 = vector.load %arg9[%c0_23, %c0_24] : memref<1x784xf32, #tpu.memory_space<vmem>>, vector<1x784xf32>
    %35 = vector.broadcast %34 : vector<1x784xf32> to vector<8x784xf32>
    %36 = arith.addf %33, %35 : vector<8x784xf32>
    %cst_25 = arith.constant 0.000000e+00 : f32
    %37 = vector.broadcast %cst_25 : f32 to vector<8x784xf32>
    %38 = arith.subf %37, %36 : vector<8x784xf32>
    %39 = math.exp %38 : vector<8x784xf32>
    %cst_26 = arith.constant 1.000000e+00 : f32
    %40 = vector.broadcast %cst_26 : f32 to vector<8x784xf32>
    %41 = arith.addf %40, %39 : vector<8x784xf32>
    %42 = tpu.reciprocal %41 {approx = true} : vector<8x784xf32> -> vector<8x784xf32>
    %c0_27 = arith.constant 0 : index
    %c0_28 = arith.constant 0 : index
    %43 = vector.load %arg11[%c0_27, %c0_28] : memref<8x784xf32, #tpu.memory_space<vmem>>, vector<8x784xf32>
    tpu.vector_store %arg11[%c0_27, %c0_28], %42 {strides = array<i32>} : memref<8x784xf32, #tpu.memory_space<vmem>>, vector<8x784xf32>,
    %c0_29 = arith.constant 0 : index
    %c0_30 = arith.constant 0 : index
    %44 = vector.load %arg12[%c0_29, %c0_30] : memref<8x40xf32, #tpu.memory_space<vmem>>, vector<8x40xf32>
    tpu.vector_store %arg12[%c0_29, %c0_30], %14 {strides = array<i32>} : memref<8x40xf32, #tpu.memory_space<vmem>>, vector<8x40xf32>,
    return
  }
  func.func @transform_0(%arg0: i32) -> (i32, i32) {
    %c0_i32 = arith.constant 0 : i32
    %c0_i32_0 = arith.constant 0 : i32
    return %arg0, %c0_i32 : i32, i32
  }
  func.func @transform_1(%arg0: i32) -> (i32, i32) {
    %c0_i32 = arith.constant 0 : i32
    %c0_i32_0 = arith.constant 0 : i32
    %c0_i32_1 = arith.constant 0 : i32
    return %c0_i32, %c0_i32_0 : i32, i32
  }
  func.func @transform_2(%arg0: i32) -> (i32, i32) {
    %c0_i32 = arith.constant 0 : i32
    %c0_i32_0 = arith.constant 0 : i32
    %c0_i32_1 = arith.constant 0 : i32
    return %c0_i32, %c0_i32_0 : i32, i32
  }
  func.func @transform_3(%arg0: i32) -> (i32, i32) {
    %c0_i32 = arith.constant 0 : i32
    %c0_i32_0 = arith.constant 0 : i32
    %c0_i32_1 = arith.constant 0 : i32
    return %c0_i32, %c0_i32_0 : i32, i32
  }
  func.func @transform_4(%arg0: i32) -> (i32, i32) {
    %c0_i32 = arith.constant 0 : i32
    %c0_i32_0 = arith.constant 0 : i32
    %c0_i32_1 = arith.constant 0 : i32
    return %c0_i32, %c0_i32_0 : i32, i32
  }
  func.func @transform_5(%arg0: i32) -> (i32, i32) {
    %c0_i32 = arith.constant 0 : i32
    %c0_i32_0 = arith.constant 0 : i32
    %c0_i32_1 = arith.constant 0 : i32
    return %c0_i32, %c0_i32_0 : i32, i32
  }
  func.func @transform_6(%arg0: i32) -> (i32, i32) {
    %c0_i32 = arith.constant 0 : i32
    %c0_i32_0 = arith.constant 0 : i32
    %c0_i32_1 = arith.constant 0 : i32
    return %c0_i32, %c0_i32_0 : i32, i32
  }
  func.func @transform_7(%arg0: i32) -> (i32, i32) {
    %c0_i32 = arith.constant 0 : i32
    %c0_i32_0 = arith.constant 0 : i32
    %c0_i32_1 = arith.constant 0 : i32
    return %c0_i32, %c0_i32_0 : i32, i32
  }
  func.func @transform_8(%arg0: i32) -> (i32, i32) {
    %c0_i32 = arith.constant 0 : i32
    %c0_i32_0 = arith.constant 0 : i32
    %c0_i32_1 = arith.constant 0 : i32
    return %c0_i32, %c0_i32_0 : i32, i32
  }
  func.func @transform_9(%arg0: i32) -> (i32, i32) {
    %c0_i32 = arith.constant 0 : i32
    %c0_i32_0 = arith.constant 0 : i32
    return %arg0, %c0_i32 : i32, i32
  }
  func.func @transform_10(%arg0: i32) -> (i32, i32) {
    %c0_i32 = arith.constant 0 : i32
    %c0_i32_0 = arith.constant 0 : i32
    return %arg0, %c0_i32 : i32, i32
  }
  func.func @transform_11(%arg0: i32) -> (i32, i32) {
    %c0_i32 = arith.constant 0 : i32
    %c0_i32_0 = arith.constant 0 : i32
    return %arg0, %c0_i32 : i32, i32
  }
}

</mosaic_0001>

<bundles_post_ra>
// kernel: tpu_custom_call.1
= control target key start
LH: loop header
LB: loop body
LE: loop exit
PB: predicated region body
PF: predicated region fallthrough
CT: control target
= control target key end

     0   :  { %17 = vsyncpa [#allocation3], 0  ;;  %v4761_v2 = vmov 0   ;;  %vm1252_vm0 = vcmask 130048   ;;  %s6205_s0 = inlined_call_operand.vmem [shape: f32[8,784], index: 0, kind: input, shape index: {}]   ;;  %s6206_s1 = inlined_call_operand.vmem [shape: bf16[784,400], index: 1, kind: input, shape index: {}]   ;;  %s6207_s2 = inlined_call_operand.vmem [shape: f32[1,400], index: 2, kind: input, shape index: {}]   ;;  %s6208_s3 = inlined_call_operand.vmem [shape: bf16[400,40], index: 3, kind: input, shape index: {}]   ;;  %s6209_s4 = inlined_call_operand.vmem [shape: f32[1,40], index: 4, kind: input, shape index: {}]   ;;  %s6210_s5 = inlined_call_operand.vmem [shape: bf16[20,400], index: 5, kind: input, shape index: {}]   ;;  %s6211_s6 = inlined_call_operand.vmem [shape: f32[1,400], index: 6, kind: input, shape index: {}]   ;;  %s6212_s7 = inlined_call_operand.vmem [shape: bf16[400,784], index: 7, kind: input, shape index: {}]   ;;  %s6213_s8 = inlined_call_operand.vmem [shape: f32[1,784], index: 8, kind: input, shape index: {}]   ;;  %s6214_s9 = inlined_call_operand.vmem [shape: f32[8,20], index: 9, kind: input, shape index: {}]   ;;  %s6215_s10 = inlined_call_operand.hbm [shape: f32[8,784], index: 10, kind: output, shape index: {0}]   ;;  %s6216_s11 = inlined_call_operand.hbm [shape: f32[8,40], index: 11, kind: output, shape index: {1}]  }
   0x1   :  { %v4104_v0 = vld [vmem:[%s6206_s1 + $0x4] ss:$16 sps:$4 sm:$0xff]   ;;  %1411 = vmatprep.mubr.bf16.mxu1 %v4761_v2  ;;  %v4108_v3 = vld [vmem:[%s6206_s1] ss:$16 sps:$4 sm:$0xff]   ;;  %v4112_v8 = vld [vmem:[%s6206_s1 + $0x8] ss:$16 sps:$4 sm:$0xff]  }
   0x2   :  { %v4106_v1 = vld [vmem:[%s6206_s1 + $0x604] ss:$16 sps:$4 sm:$0xff]   ;;  %1256 = vmatprep.subr.bf16.mxu0 %v4104_v0  ;;  %v4109_v4 = vld [vmem:[%s6206_s1 + $0x600] ss:$16 sps:$4 sm:$0xff]   ;;  %v4114_v9 = vld [vmem:[%s6206_s1 + $0xc] ss:$16 sps:$4 sm:$0xff]  }
   0x3   :  { %1379 = vmatprep.subr.bf16.mxu1 %v4106_v1  ;;  %v4110_v5 = vld [vmem:[%s6206_s1 + $0x24] ss:$16 sps:$4 sm:$0xff]   ;;  %1257 = vmatpush1.bf16.msra.mxu0 %v4108_v3  ;;  %v4115_v10 = vld [vmem:[%s6206_s1 + $0x20] ss:$16 sps:$4 sm:$0xff]   ;;  %v4118_v12 = vld [vmem:[%s6206_s1 + $0x28] ss:$16 sps:$4 sm:$0xff]  }
   0x4   :  { %v46_v6 = vld [vmem:[%s6205_s0 + $0x30] sm:$0xff]  ;;  %1380 = vmatpush1.bf16.msra.mxu1 %v4109_v4  ;;  %1258 = vmatprep.subr.bf16.mxu0 %v4110_v5  ;;  %v4120_v13 = vld [vmem:[%s6206_s1 + $0x2c] ss:$16 sps:$4 sm:$0xff]   ;;  %v4124_v17 = vld [vmem:[%s6206_s1 + $0x48] ss:$16 sps:$4 sm:$0xff]  }
   0x5   :  { %v4844_v7 = vpack.c.bf16 %v46_v6, %v46_v6  ;;  %v4116_v11 = vld [vmem:[%s6206_s1 + $0x44] ss:$16 sps:$4 sm:$0xff]   ;;  %1420 = vmatprep.subr.bf16.mxu1 %v4114_v9  ;;  %v4121_v14 = vld [vmem:[%s6206_s1 + $0x40] ss:$16 sps:$4 sm:$0xff]   ;;  %v4126_v16 = vld [vmem:[%s6206_s1 + $0x4c] ss:$16 sps:$4 sm:$0xff]  }
   0x6   :  { %v4122_v15 = vld [vmem:[%s6206_s1 + $0x64] ss:$16 sps:$4 sm:$0xff]   ;;  %v4127_v18 = vld [vmem:[%s6206_s1 + $0x60] ss:$16 sps:$4 sm:$0xff]   ;;  %v4132_v20 = vld [vmem:[%s6206_s1 + $0x6c] ss:$16 sps:$4 sm:$0xff]  }
   0x7   :  { %3792 = vmatmul.mubr.msk.bf16.vlgmr.msra.gmra.mrb[0].mxu1 %vm1252_vm0, %v4844_v7  ;;  %1259 = vmatpush1.bf16.msra.mxu0 %v4115_v10  ;;  %v4128_v19 = vld [vmem:[%s6206_s1 + $0x84] ss:$16 sps:$4 sm:$0xff]   ;;  %v4130_v21 = vld [vmem:[%s6206_s1 + $0x68] ss:$16 sps:$4 sm:$0xff]   ;;  %v4133_v22 = vld [vmem:[%s6206_s1 + $0x80] ss:$16 sps:$4 sm:$0xff]  }
   0x8   :  { %1421 = vmatpush1.bf16.msra.mxu1 %v4112_v8  ;;  %1260 = vmatprep.subr.bf16.mxu0 %v4116_v11  ;;  %v4134_v23 = vld [vmem:[%s6206_s1 + $0xa4] ss:$16 sps:$4 sm:$0xff]   ;;  %v4138_v24 = vld [vmem:[%s6206_s1 + $0x8c] ss:$16 sps:$4 sm:$0xff]   ;;  %v4136_v25 = vld [vmem:[%s6206_s1 + $0x88] ss:$16 sps:$4 sm:$0xff]  }
   0x9   :  { %1422 = vmatprep.subr.bf16.mxu1 %v4120_v13  ;;  %v4139_v26 = vld [vmem:[%s6206_s1 + $0xa0] ss:$16 sps:$4 sm:$0xff]   ;;  %v4140_v27 = vld [vmem:[%s6206_s1 + $0xc4] ss:$16 sps:$4 sm:$0xff]   ;;  %v4144_v28 = vld [vmem:[%s6206_s1 + $0xac] ss:$16 sps:$4 sm:$0xff]  }
   0xa   :  { %v4142_v29 = vld [vmem:[%s6206_s1 + $0xa8] ss:$16 sps:$4 sm:$0xff]   ;;  %v4145_v30 = vld [vmem:[%s6206_s1 + $0xc0] ss:$16 sps:$4 sm:$0xff]   ;;  %v4146_v31 = vld [vmem:[%s6206_s1 + $0xe4] ss:$16 sps:$4 sm:$0xff]  }
   0xb   :  { %1261 = vmatpush1.bf16.msra.mxu0 %v4121_v14  ;;  %v4150_v32 = vld [vmem:[%s6206_s1 + $0xcc] ss:$16 sps:$4 sm:$0xff]   ;;  %v4148_v33 = vld [vmem:[%s6206_s1 + $0xc8] ss:$16 sps:$4 sm:$0xff]   ;;  %v4151_v34 = vld [vmem:[%s6206_s1 + $0xe0] ss:$16 sps:$4 sm:$0xff]  }
   0xc   :  { %1423 = vmatpush1.bf16.msra.mxu1 %v4118_v12  ;;  %1262 = vmatprep.subr.bf16.mxu0 %v4122_v15  ;;  %v4152_v35 = vld [vmem:[%s6206_s1 + $0x104] ss:$16 sps:$4 sm:$0xff]   ;;  %v4156_v36 = vld [vmem:[%s6206_s1 + $0xec] ss:$16 sps:$4 sm:$0xff]   ;;  %v4154_v37 = vld [vmem:[%s6206_s1 + $0xe8] ss:$16 sps:$4 sm:$0xff]  }
   0xd   :  { %1424 = vmatprep.subr.bf16.mxu1 %v4126_v16  ;;  %v4157_v38 = vld [vmem:[%s6206_s1 + $0x100] ss:$16 sps:$4 sm:$0xff]   ;;  %v4158_v39 = vld [vmem:[%s6206_s1 + $0x124] ss:$16 sps:$4 sm:$0xff]   ;;  %v4162_v40 = vld [vmem:[%s6206_s1 + $0x10c] ss:$16 sps:$4 sm:$0xff]  }
   0xe   :  { %v4160_v41 = vld [vmem:[%s6206_s1 + $0x108] ss:$16 sps:$4 sm:$0xff]   ;;  %v4163_v42 = vld [vmem:[%s6206_s1 + $0x120] ss:$16 sps:$4 sm:$0xff]   ;;  %v4164_v43 = vld [vmem:[%s6206_s1 + $0x144] ss:$16 sps:$4 sm:$0xff]  }
   0xf   :  { %1263 = vmatpush1.bf16.msra.mxu0 %v4127_v18  ;;  %v4168_v44 = vld [vmem:[%s6206_s1 + $0x12c] ss:$16 sps:$4 sm:$0xff]   ;;  %v4166_v45 = vld [vmem:[%s6206_s1 + $0x128] ss:$16 sps:$4 sm:$0xff]   ;;  %v4169_v46 = vld [vmem:[%s6206_s1 + $0x140] ss:$16 sps:$4 sm:$0xff]  }
  0x10   :  { %1425 = vmatpush1.bf16.msra.mxu1 %v4124_v17  ;;  %1264 = vmatprep.subr.bf16.mxu0 %v4128_v19  ;;  %v4170_v47 = vld [vmem:[%s6206_s1 + $0x164] ss:$16 sps:$4 sm:$0xff]   ;;  %v4174_v48 = vld [vmem:[%s6206_s1 + $0x14c] ss:$16 sps:$4 sm:$0xff]   ;;  %v4172_v50 = vld [vmem:[%s6206_s1 + $0x148] ss:$16 sps:$4 sm:$0xff]  }
  0x11   :  { %1426 = vmatprep.subr.bf16.mxu1 %v4132_v20  ;;  %v41_v49 = vld [vmem:[%s6205_s0 + $0x8] sm:$0xff]  ;;  %v4175_v51 = vld [vmem:[%s6206_s1 + $0x160] ss:$16 sps:$4 sm:$0xff]   ;;  %v4176_v53 = vld [vmem:[%s6206_s1 + $0x184] ss:$16 sps:$4 sm:$0xff]  }
  0x12   :  { %v48_v52 = vpack.c.bf16 %v41_v49, %v41_v49  ;;  %v4180_v54 = vld [vmem:[%s6206_s1 + $0x16c] ss:$16 sps:$4 sm:$0xff]   ;;  %v4178_v55 = vld [vmem:[%s6206_s1 + $0x168] ss:$16 sps:$4 sm:$0xff]   ;;  %v4181_v56 = vld [vmem:[%s6206_s1 + $0x180] ss:$16 sps:$4 sm:$0xff]  }
  0x13   :  { %1265 = vmatpush1.bf16.msra.mxu0 %v4133_v22  ;;  %v4182_v57 = vld [vmem:[%s6206_s1 + $0x1a4] ss:$16 sps:$4 sm:$0xff]   ;;  %v4186_v58 = vld [vmem:[%s6206_s1 + $0x18c] ss:$16 sps:$4 sm:$0xff]   ;;  %v4184_v59 = vld [vmem:[%s6206_s1 + $0x188] ss:$16 sps:$4 sm:$0xff]  }
  0x14   :  { %1427 = vmatpush1.bf16.msra.mxu1 %v4130_v21  ;;  %1266 = vmatprep.subr.bf16.mxu0 %v4134_v23  ;;  %v4187_v60 = vld [vmem:[%s6206_s1 + $0x1a0] ss:$16 sps:$4 sm:$0xff]   ;;  %v4188_v61 = vld [vmem:[%s6206_s1 + $0x1c4] ss:$16 sps:$4 sm:$0xff]   ;;  %v4192_v62 = vld [vmem:[%s6206_s1 + $0x1ac] ss:$16 sps:$4 sm:$0xff]  }
  0x15   :  { %1428 = vmatprep.subr.bf16.mxu1 %v4138_v24  ;;  %1288 = vmatprep.mubr.bf16.mxu0 %v48_v52  ;;  %v4190_v63 = vld [vmem:[%s6206_s1 + $0x1a8] ss:$16 sps:$4 sm:$0xff]   ;;  %v4193_v0 = vld [vmem:[%s6206_s1 + $0x1c0] ss:$16 sps:$4 sm:$0xff]   ;;  %v4194_v1 = vld [vmem:[%s6206_s1 + $0x1e4] ss:$16 sps:$4 sm:$0xff]  }
  0x16   :  { %1452 = vmatprep.mubr.bf16.mxu1 %v48_v52  ;;  %v4198_v3 = vld [vmem:[%s6206_s1 + $0x1cc] ss:$16 sps:$4 sm:$0xff]   ;;  %v4196_v4 = vld [vmem:[%s6206_s1 + $0x1c8] ss:$16 sps:$4 sm:$0xff]   ;;  %v4199_v5 = vld [vmem:[%s6206_s1 + $0x1e0] ss:$16 sps:$4 sm:$0xff]  }
  0x17   :  { %1267 = vmatpush1.bf16.msra.mxu0 %v4139_v26  ;;  %v4202_v6 = vld [vmem:[%s6206_s1 + $0x204] ss:$16 sps:$4 sm:$0xff]   ;;  %v4205_v9 = vld [vmem:[%s6206_s1 + $0x1ec] ss:$16 sps:$4 sm:$0xff]   ;;  %v4200_v10 = vld [vmem:[%s6206_s1 + $0x200] ss:$16 sps:$4 sm:$0xff]  }
  0x18   :  { %1429 = vmatpush1.bf16.msra.mxu1 %v4136_v25  ;;  %1268 = vmatprep.subr.bf16.mxu0 %v4140_v27  ;;  %v40_v8 = vld [vmem:[%s6205_s0] sm:$0xff]  ;;  %v4203_v12 = vld [vmem:[%s6206_s1 + $0x1e8] ss:$16 sps:$4 sm:$0xff]   ;;  %v4211_v14 = vld [vmem:[%s6206_s1 + $0x20c] ss:$16 sps:$4 sm:$0xff]  }
  0x19   :  { %1430 = vmatprep.subr.bf16.mxu1 %v4144_v28  ;;  %v47_v11 = vpack.c.bf16 %v40_v8, %v40_v8  ;;  %v4208_v13 = vld [vmem:[%s6206_s1 + $0x224] ss:$16 sps:$4 sm:$0xff]   ;;  %v4206_v15 = vld [vmem:[%s6206_s1 + $0x220] ss:$16 sps:$4 sm:$0xff]   ;;  %v4209_v16 = vld [vmem:[%s6206_s1 + $0x208] ss:$16 sps:$4 sm:$0xff]  }
  0x1a   :  { %v4214_v17 = vld [vmem:[%s6206_s1 + $0x244] ss:$16 sps:$4 sm:$0xff]   ;;  %v4217_v18 = vld [vmem:[%s6206_s1 + $0x22c] ss:$16 sps:$4 sm:$0xff]   ;;  %v4212_v19 = vld [vmem:[%s6206_s1 + $0x240] ss:$16 sps:$4 sm:$0xff]  }
  0x1b   :  { %1269 = vmatpush1.bf16.msra.mxu0 %v4145_v30  ;;  %v4215_v20 = vld [vmem:[%s6206_s1 + $0x228] ss:$16 sps:$4 sm:$0xff]   ;;  %v4220_v21 = vld [vmem:[%s6206_s1 + $0x264] ss:$16 sps:$4 sm:$0xff]   ;;  %v4223_v22 = vld [vmem:[%s6206_s1 + $0x24c] ss:$16 sps:$4 sm:$0xff]  }
  0x1c   :  { %1431 = vmatpush1.bf16.msra.mxu1 %v4142_v29  ;;  %1270 = vmatprep.subr.bf16.mxu0 %v4146_v31  ;;  %v4218_v23 = vld [vmem:[%s6206_s1 + $0x260] ss:$16 sps:$4 sm:$0xff]   ;;  %v4221_v24 = vld [vmem:[%s6206_s1 + $0x248] ss:$16 sps:$4 sm:$0xff]   ;;  %v4226_v25 = vld [vmem:[%s6206_s1 + $0x284] ss:$16 sps:$4 sm:$0xff]  }
  0x1d   :  { %1432 = vmatprep.subr.bf16.mxu1 %v4150_v32  ;;  %v4229_v26 = vld [vmem:[%s6206_s1 + $0x26c] ss:$16 sps:$4 sm:$0xff]   ;;  %v4224_v27 = vld [vmem:[%s6206_s1 + $0x280] ss:$16 sps:$4 sm:$0xff]   ;;  %v4227_v28 = vld [vmem:[%s6206_s1 + $0x268] ss:$16 sps:$4 sm:$0xff]  }
  0x1e   :  { %v4232_v29 = vld [vmem:[%s6206_s1 + $0x2a4] ss:$16 sps:$4 sm:$0xff]   ;;  %v4235_v30 = vld [vmem:[%s6206_s1 + $0x28c] ss:$16 sps:$4 sm:$0xff]   ;;  %v4230_v31 = vld [vmem:[%s6206_s1 + $0x2a0] ss:$16 sps:$4 sm:$0xff]  }
  0x1f   :  { %1271 = vmatpush1.bf16.msra.mxu0 %v4151_v34  ;;  %v4233_v32 = vld [vmem:[%s6206_s1 + $0x288] ss:$16 sps:$4 sm:$0xff]   ;;  %v4241_v34 = vld [vmem:[%s6206_s1 + $0x2ac] ss:$16 sps:$4 sm:$0xff]   ;;  %v4254_v49 = vld [vmem:[%s6206_s1 + $0x320] ss:$16 sps:$4 sm:$0xff]  }
  0x20   :  { %1433 = vmatpush1.bf16.msra.mxu1 %v4148_v33  ;;  %1272 = vmatprep.subr.bf16.mxu0 %v4152_v35  ;;  %v4238_v33 = vld [vmem:[%s6206_s1 + $0x2c4] ss:$16 sps:$4 sm:$0xff]   ;;  %v43_v35 = vld [vmem:[%s6205_s0 + $0x18] sm:$0xff] }
  0x21   :  { %1434 = vmatprep.subr.bf16.mxu1 %v4156_v36  ;;  %v4236_v36 = vld [vmem:[%s6206_s1 + $0x2c0] ss:$16 sps:$4 sm:$0xff]   ;;  %v4265_v52 = vld [vmem:[%s6206_s1 + $0x32c] ss:$16 sps:$4 sm:$0xff]   ;;  %v4287_v8 = vld [vmem:[%s6206_s1 + $0x3a8] ss:$16 sps:$4 sm:$0xff]  }
  0x23   :  { %1273 = vmatpush1.bf16.msra.mxu0 %v4157_v38  ;;  %v4239_v38 = vld [vmem:[%s6206_s1 + $0x2a8] ss:$16 sps:$4 sm:$0xff]  }
  0x24   :  { %1435 = vmatpush1.bf16.msra.mxu1 %v4154_v37  ;;  %1274 = vmatprep.subr.bf16.mxu0 %v4158_v39  ;;  %v50_v37 = vpack.c.bf16 %v43_v35, %v43_v35  ;;  %v4244_v39 = vld [vmem:[%s6206_s1 + $0x2e4] ss:$16 sps:$4 sm:$0xff]   ;;  %v4320_v35 = vld [vmem:[%s6206_s1 + $0x480] ss:$16 sps:$4 sm:$0xff]  }
  0x25   :  { %1436 = vmatprep.subr.bf16.mxu1 %v4162_v40  ;;  %v4247_v40 = vld [vmem:[%s6206_s1 + $0x2cc] ss:$16 sps:$4 sm:$0xff]  }
  0x27   :  { %1275 = vmatpush1.bf16.msra.mxu0 %v4163_v42  ;;  %v4245_v42 = vld [vmem:[%s6206_s1 + $0x2c8] ss:$16 sps:$4 sm:$0xff]  }
  0x28   :  { %1437 = vmatpush1.bf16.msra.mxu1 %v4160_v41  ;;  %1276 = vmatprep.subr.bf16.mxu0 %v4164_v43  ;;  %v4242_v41 = vld [vmem:[%s6206_s1 + $0x2e0] ss:$16 sps:$4 sm:$0xff]   ;;  %v4250_v43 = vld [vmem:[%s6206_s1 + $0x304] ss:$16 sps:$4 sm:$0xff]  }
  0x29   :  { %1438 = vmatprep.subr.bf16.mxu1 %v4168_v44  ;;  %v4253_v44 = vld [vmem:[%s6206_s1 + $0x2ec] ss:$16 sps:$4 sm:$0xff]  }
  0x2b   :  { %1277 = vmatpush1.bf16.msra.mxu0 %v4169_v46  ;;  %v4251_v46 = vld [vmem:[%s6206_s1 + $0x2e8] ss:$16 sps:$4 sm:$0xff]  }
  0x2c   :  { %1439 = vmatpush1.bf16.msra.mxu1 %v4166_v45  ;;  %1278 = vmatprep.subr.bf16.mxu0 %v4170_v47  ;;  %v4248_v45 = vld [vmem:[%s6206_s1 + $0x300] ss:$16 sps:$4 sm:$0xff]   ;;  %v4256_v47 = vld [vmem:[%s6206_s1 + $0x324] ss:$16 sps:$4 sm:$0xff]  }
  0x2d   :  { %1440 = vmatprep.subr.bf16.mxu1 %v4174_v48  ;;  %v4259_v48 = vld [vmem:[%s6206_s1 + $0x30c] ss:$16 sps:$4 sm:$0xff]  }
  0x2f   :  { %1279 = vmatpush1.bf16.msra.mxu0 %v4175_v51  ;;  %v4262_v51 = vld [vmem:[%s6206_s1 + $0x344] ss:$16 sps:$4 sm:$0xff]  }
  0x30   :  { %1441 = vmatpush1.bf16.msra.mxu1 %v4172_v50  ;;  %1280 = vmatprep.subr.bf16.mxu0 %v4176_v53  ;;  %v4257_v50 = vld [vmem:[%s6206_s1 + $0x308] ss:$16 sps:$4 sm:$0xff]   ;;  %v4260_v53 = vld [vmem:[%s6206_s1 + $0x340] ss:$16 sps:$4 sm:$0xff]  }
  0x31   :  { %1442 = vmatprep.subr.bf16.mxu1 %v4180_v54  ;;  %v4263_v54 = vld [vmem:[%s6206_s1 + $0x328] ss:$16 sps:$4 sm:$0xff]  }
  0x33   :  { %1281 = vmatpush1.bf16.msra.mxu0 %v4181_v56  ;;  %v4271_v56 = vld [vmem:[%s6206_s1 + $0x34c] ss:$16 sps:$4 sm:$0xff]  }
  0x34   :  { %1443 = vmatpush1.bf16.msra.mxu1 %v4178_v55  ;;  %1282 = vmatprep.subr.bf16.mxu0 %v4182_v57  ;;  %v4268_v55 = vld [vmem:[%s6206_s1 + $0x364] ss:$16 sps:$4 sm:$0xff]   ;;  %v4266_v57 = vld [vmem:[%s6206_s1 + $0x360] ss:$16 sps:$4 sm:$0xff]  }
  0x35   :  { %1444 = vmatprep.subr.bf16.mxu1 %v4186_v58  ;;  %v4269_v58 = vld [vmem:[%s6206_s1 + $0x348] ss:$16 sps:$4 sm:$0xff]  }
  0x37   :  { %1283 = vmatpush1.bf16.msra.mxu0 %v4187_v60  ;;  %v4277_v60 = vld [vmem:[%s6206_s1 + $0x36c] ss:$16 sps:$4 sm:$0xff]  }
  0x38   :  { %1445 = vmatpush1.bf16.msra.mxu1 %v4184_v59  ;;  %1284 = vmatprep.subr.bf16.mxu0 %v4188_v61  ;;  %v4274_v59 = vld [vmem:[%s6206_s1 + $0x384] ss:$16 sps:$4 sm:$0xff]   ;;  %v4272_v61 = vld [vmem:[%s6206_s1 + $0x380] ss:$16 sps:$4 sm:$0xff]  }
  0x39   :  { %1446 = vmatprep.subr.bf16.mxu1 %v4192_v62  ;;  %v4275_v62 = vld [vmem:[%s6206_s1 + $0x368] ss:$16 sps:$4 sm:$0xff]  }
  0x3b   :  { %1285 = vmatpush1.bf16.msra.mxu0 %v4193_v0  ;;  %v4283_v0 = vld [vmem:[%s6206_s1 + $0x38c] ss:$16 sps:$4 sm:$0xff]  }
  0x3c   :  { %1447 = vmatpush1.bf16.msra.mxu1 %v4190_v63  ;;  %1286 = vmatprep.subr.bf16.mxu0 %v4194_v1  ;;  %v4280_v63 = vld [vmem:[%s6206_s1 + $0x3a4] ss:$16 sps:$4 sm:$0xff]   ;;  %v4278_v1 = vld [vmem:[%s6206_s1 + $0x3a0] ss:$16 sps:$4 sm:$0xff]  }
  0x3d   :  { %1448 = vmatprep.subr.bf16.mxu1 %v4198_v3  ;;  %v4281_v3 = vld [vmem:[%s6206_s1 + $0x388] ss:$16 sps:$4 sm:$0xff]  }
  0x3f   :  { %1287 = vmatpush1.bf16.msra.mxu0 %v4199_v5  ;;  %v4289_v5 = vld [vmem:[%s6206_s1 + $0x3ac] ss:$16 sps:$4 sm:$0xff]  }
  0x40   :  { %1449 = vmatpush1.bf16.msra.mxu1 %v4196_v4  ;;  %1297 = vmatprep.subr.bf16.mxu0 %v4202_v6  ;;  %v4286_v4 = vld [vmem:[%s6206_s1 + $0x3c4] ss:$16 sps:$4 sm:$0xff]   ;;  %v4284_v6 = vld [vmem:[%s6206_s1 + $0x3c0] ss:$16 sps:$4 sm:$0xff]  }
  0x41   :  { %1450 = vmatprep.subr.bf16.mxu1 %v4205_v9  ;;  %v4292_v9 = vld [vmem:[%s6206_s1 + $0x3e4] ss:$16 sps:$4 sm:$0xff]  }
  0x42   :  { %1289 = vmatmul.mubr.bf16.vlgmr.msra.gmra.mrb[0].mxu0 %v47_v11 }
  0x43   :  { %1298 = vmatpush1.bf16.msra.mxu0 %v4200_v10  ;;  %1329 = vmatprep.mubr.bf16.mxu0 %v50_v37  ;;  %v4295_v10 = vld [vmem:[%s6206_s1 + $0x3cc] ss:$16 sps:$4 sm:$0xff]  }
  0x44   :  { %1451 = vmatpush1.bf16.msra.mxu1 %v4203_v12  ;;  %1299 = vmatprep.subr.bf16.mxu0 %v4208_v13  ;;  %v4293_v12 = vld [vmem:[%s6206_s1 + $0x3c8] ss:$16 sps:$4 sm:$0xff]   ;;  %v42_v13 = vld [vmem:[%s6205_s0 + $0x10] sm:$0xff] }
  0x45   :  { %1461 = vmatprep.subr.bf16.mxu1 %v4211_v14  ;;  %v4298_v14 = vld [vmem:[%s6206_s1 + $0x404] ss:$16 sps:$4 sm:$0xff]  }
  0x47   :  { %1453 = vmatmul.mubr.bf16.vlgmr.msra.gmra.mrb[4].mxu1 %v47_v11  ;;  %1300 = vmatpush1.bf16.msra.mxu0 %v4206_v15  ;;  %v4290_v11 = vld [vmem:[%s6206_s1 + $0x3e0] ss:$16 sps:$4 sm:$0xff]   ;;  %v4301_v15 = vld [vmem:[%s6206_s1 + $0x3ec] ss:$16 sps:$4 sm:$0xff]  }
  0x48   :  { %1462 = vmatpush1.bf16.msra.mxu1 %v4209_v16  ;;  %1301 = vmatprep.subr.bf16.mxu0 %v4214_v17  ;;  %v4296_v16 = vld [vmem:[%s6206_s1 + $0x400] ss:$16 sps:$4 sm:$0xff]   ;;  %v49_v17 = vpack.c.bf16 %v42_v13, %v42_v13 }
  0x49   :  { %1463 = vmatprep.subr.bf16.mxu1 %v4217_v18  ;;  %1493 = vmatprep.mubr.bf16.mxu1 %v50_v37  ;;  %v4299_v18 = vld [vmem:[%s6206_s1 + $0x3e8] ss:$16 sps:$4 sm:$0xff]   ;;  %v4328_v37 = vld [vmem:[%s6206_s1 + $0x4a4] ss:$16 sps:$4 sm:$0xff]   ;;  %v4380_v13 = vld [vmem:[%s6206_s1 + $0x5c0] ss:$16 sps:$4 sm:$0xff]  }
  0x4b   :  { %1302 = vmatpush1.bf16.msra.mxu0 %v4212_v19  ;;  %v4304_v19 = vld [vmem:[%s6206_s1 + $0x424] ss:$16 sps:$4 sm:$0xff]  }
  0x4c   :  { %1464 = vmatpush1.bf16.msra.mxu1 %v4215_v20  ;;  %1303 = vmatprep.subr.bf16.mxu0 %v4220_v21  ;;  %v4307_v20 = vld [vmem:[%s6206_s1 + $0x40c] ss:$16 sps:$4 sm:$0xff]  }
  0x4d   :  { %1465 = vmatprep.subr.bf16.mxu1 %v4223_v22  ;;  %v45_v21 = vld [vmem:[%s6205_s0 + $0x28] sm:$0xff] }
  0x4e   :  { %v52_v22 = vpack.c.bf16 %v45_v21, %v45_v21  ;;  %v4398_v21 = vld [vmem:[%s6208_s3 + $0x40] sm:$0xff]  }
  0x4f   :  { %1304 = vmatpush1.bf16.msra.mxu0 %v4218_v23  ;;  %v4302_v23 = vld [vmem:[%s6206_s1 + $0x420] ss:$16 sps:$4 sm:$0xff]  }
  0x50   :  { %1466 = vmatpush1.bf16.msra.mxu1 %v4221_v24  ;;  %1305 = vmatprep.subr.bf16.mxu0 %v4226_v25  ;;  %v4305_v24 = vld [vmem:[%s6206_s1 + $0x408] ss:$16 sps:$4 sm:$0xff]   ;;  %v4310_v25 = vld [vmem:[%s6206_s1 + $0x444] ss:$16 sps:$4 sm:$0xff]  }
  0x51   :  { %1467 = vmatprep.subr.bf16.mxu1 %v4229_v26  ;;  %v4313_v26 = vld [vmem:[%s6206_s1 + $0x42c] ss:$16 sps:$4 sm:$0xff]  }
  0x53   :  { %1306 = vmatpush1.bf16.msra.mxu0 %v4224_v27  ;;  %v4308_v27 = vld [vmem:[%s6206_s1 + $0x440] ss:$16 sps:$4 sm:$0xff]  }
  0x54   :  { %1468 = vmatpush1.bf16.msra.mxu1 %v4227_v28  ;;  %1307 = vmatprep.subr.bf16.mxu0 %v4232_v29  ;;  %v4311_v28 = vld [vmem:[%s6206_s1 + $0x428] ss:$16 sps:$4 sm:$0xff]   ;;  %v4316_v29 = vld [vmem:[%s6206_s1 + $0x464] ss:$16 sps:$4 sm:$0xff]  }
  0x55   :  { %1469 = vmatprep.subr.bf16.mxu1 %v4235_v30  ;;  %v4319_v30 = vld [vmem:[%s6206_s1 + $0x44c] ss:$16 sps:$4 sm:$0xff]  }
  0x57   :  { %1308 = vmatpush1.bf16.msra.mxu0 %v4230_v31  ;;  %v4314_v31 = vld [vmem:[%s6206_s1 + $0x460] ss:$16 sps:$4 sm:$0xff]  }
  0x58   :  { %1470 = vmatpush1.bf16.msra.mxu1 %v4233_v32  ;;  %1309 = vmatprep.subr.bf16.mxu0 %v4238_v33  ;;  %v4317_v32 = vld [vmem:[%s6206_s1 + $0x448] ss:$16 sps:$4 sm:$0xff]   ;;  %v4322_v33 = vld [vmem:[%s6206_s1 + $0x484] ss:$16 sps:$4 sm:$0xff]  }
  0x59   :  { %1471 = vmatprep.subr.bf16.mxu1 %v4241_v34  ;;  %v4325_v34 = vld [vmem:[%s6206_s1 + $0x46c] ss:$16 sps:$4 sm:$0xff]  }
  0x5b   :  { %1310 = vmatpush1.bf16.msra.mxu0 %v4236_v36  ;;  %v4323_v36 = vld [vmem:[%s6206_s1 + $0x468] ss:$16 sps:$4 sm:$0xff]  }
  0x5c   :  { %1472 = vmatpush1.bf16.msra.mxu1 %v4239_v38  ;;  %1311 = vmatprep.subr.bf16.mxu0 %v4244_v39  ;;  %v4331_v38 = vld [vmem:[%s6206_s1 + $0x48c] ss:$16 sps:$4 sm:$0xff]   ;;  %v4326_v39 = vld [vmem:[%s6206_s1 + $0x4a0] ss:$16 sps:$4 sm:$0xff]  }
  0x5d   :  { %1473 = vmatprep.subr.bf16.mxu1 %v4247_v40  ;;  %v4329_v40 = vld [vmem:[%s6206_s1 + $0x488] ss:$16 sps:$4 sm:$0xff]  }
  0x5f   :  { %1312 = vmatpush1.bf16.msra.mxu0 %v4242_v41  ;;  %v4334_v41 = vld [vmem:[%s6206_s1 + $0x4c4] ss:$16 sps:$4 sm:$0xff]  }
  0x60   :  { %1474 = vmatpush1.bf16.msra.mxu1 %v4245_v42  ;;  %1313 = vmatprep.subr.bf16.mxu0 %v4250_v43  ;;  %v4337_v42 = vld [vmem:[%s6206_s1 + $0x4ac] ss:$16 sps:$4 sm:$0xff]   ;;  %v4332_v43 = vld [vmem:[%s6206_s1 + $0x4c0] ss:$16 sps:$4 sm:$0xff]  }
  0x61   :  { %1475 = vmatprep.subr.bf16.mxu1 %v4253_v44  ;;  %v4335_v44 = vld [vmem:[%s6206_s1 + $0x4a8] ss:$16 sps:$4 sm:$0xff]  }
  0x63   :  { %1314 = vmatpush1.bf16.msra.mxu0 %v4248_v45  ;;  %v4340_v45 = vld [vmem:[%s6206_s1 + $0x4e4] ss:$16 sps:$4 sm:$0xff]  }
  0x64   :  { %1476 = vmatpush1.bf16.msra.mxu1 %v4251_v46  ;;  %1315 = vmatprep.subr.bf16.mxu0 %v4256_v47  ;;  %v4343_v46 = vld [vmem:[%s6206_s1 + $0x4cc] ss:$16 sps:$4 sm:$0xff]   ;;  %v4338_v47 = vld [vmem:[%s6206_s1 + $0x4e0] ss:$16 sps:$4 sm:$0xff]  }
  0x65   :  { %1477 = vmatprep.subr.bf16.mxu1 %v4259_v48  ;;  %v4341_v48 = vld [vmem:[%s6206_s1 + $0x4c8] ss:$16 sps:$4 sm:$0xff]  }
  0x67   :  { %1316 = vmatpush1.bf16.msra.mxu0 %v4254_v49  ;;  %v4346_v49 = vld [vmem:[%s6206_s1 + $0x504] ss:$16 sps:$4 sm:$0xff]  }
  0x68   :  { %1478 = vmatpush1.bf16.msra.mxu1 %v4257_v50  ;;  %1317 = vmatprep.subr.bf16.mxu0 %v4262_v51  ;;  %v4349_v50 = vld [vmem:[%s6206_s1 + $0x4ec] ss:$16 sps:$4 sm:$0xff]   ;;  %v4344_v51 = vld [vmem:[%s6206_s1 + $0x500] ss:$16 sps:$4 sm:$0xff]  }
  0x69   :  { %1479 = vmatprep.subr.bf16.mxu1 %v4265_v52  ;;  %v4347_v52 = vld [vmem:[%s6206_s1 + $0x4e8] ss:$16 sps:$4 sm:$0xff]  }
  0x6b   :  { %1318 = vmatpush1.bf16.msra.mxu0 %v4260_v53  ;;  %v4352_v53 = vld [vmem:[%s6206_s1 + $0x524] ss:$16 sps:$4 sm:$0xff]  }
  0x6c   :  { %1480 = vmatpush1.bf16.msra.mxu1 %v4263_v54  ;;  %1319 = vmatprep.subr.bf16.mxu0 %v4268_v55  ;;  %v4355_v54 = vld [vmem:[%s6206_s1 + $0x50c] ss:$16 sps:$4 sm:$0xff]   ;;  %v4350_v55 = vld [vmem:[%s6206_s1 + $0x520] ss:$16 sps:$4 sm:$0xff]  }
  0x6d   :  { %1481 = vmatprep.subr.bf16.mxu1 %v4271_v56  ;;  %v4353_v56 = vld [vmem:[%s6206_s1 + $0x508] ss:$16 sps:$4 sm:$0xff]  }
  0x6f   :  { %1320 = vmatpush1.bf16.msra.mxu0 %v4266_v57  ;;  %v4358_v57 = vld [vmem:[%s6206_s1 + $0x544] ss:$16 sps:$4 sm:$0xff]  }
  0x70   :  { %1482 = vmatpush1.bf16.msra.mxu1 %v4269_v58  ;;  %1321 = vmatprep.subr.bf16.mxu0 %v4274_v59  ;;  %v4361_v58 = vld [vmem:[%s6206_s1 + $0x52c] ss:$16 sps:$4 sm:$0xff]   ;;  %v4356_v59 = vld [vmem:[%s6206_s1 + $0x540] ss:$16 sps:$4 sm:$0xff]  }
  0x71   :  { %1483 = vmatprep.subr.bf16.mxu1 %v4277_v60  ;;  %v4359_v60 = vld [vmem:[%s6206_s1 + $0x528] ss:$16 sps:$4 sm:$0xff]  }
  0x73   :  { %1322 = vmatpush1.bf16.msra.mxu0 %v4272_v61  ;;  %v4364_v61 = vld [vmem:[%s6206_s1 + $0x564] ss:$16 sps:$4 sm:$0xff]  }
  0x74   :  { %1484 = vmatpush1.bf16.msra.mxu1 %v4275_v62  ;;  %1323 = vmatprep.subr.bf16.mxu0 %v4280_v63  ;;  %v4367_v62 = vld [vmem:[%s6206_s1 + $0x54c] ss:$16 sps:$4 sm:$0xff]   ;;  %v4362_v63 = vld [vmem:[%s6206_s1 + $0x560] ss:$16 sps:$4 sm:$0xff]  }
  0x75   :  { %1485 = vmatprep.subr.bf16.mxu1 %v4283_v0  ;;  %v4365_v0 = vld [vmem:[%s6206_s1 + $0x548] ss:$16 sps:$4 sm:$0xff]  }
  0x77   :  { %1324 = vmatpush1.bf16.msra.mxu0 %v4278_v1  ;;  %v4370_v1 = vld [vmem:[%s6206_s1 + $0x584] ss:$16 sps:$4 sm:$0xff]  }
  0x78   :  { %1486 = vmatpush1.bf16.msra.mxu1 %v4281_v3  ;;  %1325 = vmatprep.subr.bf16.mxu0 %v4286_v4  ;;  %v4373_v3 = vld [vmem:[%s6206_s1 + $0x56c] ss:$16 sps:$4 sm:$0xff]   ;;  %v4368_v4 = vld [vmem:[%s6206_s1 + $0x580] ss:$16 sps:$4 sm:$0xff]  }
  0x79   :  { %1487 = vmatprep.subr.bf16.mxu1 %v4289_v5  ;;  %v4371_v5 = vld [vmem:[%s6206_s1 + $0x568] ss:$16 sps:$4 sm:$0xff]  }
  0x7b   :  { %1326 = vmatpush1.bf16.msra.mxu0 %v4284_v6  ;;  %v4376_v6 = vld [vmem:[%s6206_s1 + $0x5a4] ss:$16 sps:$4 sm:$0xff]  }
  0x7c   :  { %1488 = vmatpush1.bf16.msra.mxu1 %v4287_v8  ;;  %1327 = vmatprep.subr.bf16.mxu0 %v4292_v9  ;;  %v4379_v8 = vld [vmem:[%s6206_s1 + $0x58c] ss:$16 sps:$4 sm:$0xff]   ;;  %v4374_v9 = vld [vmem:[%s6206_s1 + $0x5a0] ss:$16 sps:$4 sm:$0xff]  }
  0x7d   :  { %1489 = vmatprep.subr.bf16.mxu1 %v4295_v10  ;;  %v4377_v10 = vld [vmem:[%s6206_s1 + $0x588] ss:$16 sps:$4 sm:$0xff]  }
  0x7f   :  { %1328 = vmatpush1.bf16.msra.mxu0 %v4290_v11  ;;  %v4382_v11 = vld [vmem:[%s6206_s1 + $0x5c4] ss:$16 sps:$4 sm:$0xff]  }
  0x80   :  { %1490 = vmatpush1.bf16.msra.mxu1 %v4293_v12  ;;  %1338 = vmatprep.subr.bf16.mxu0 %v4298_v14  ;;  %v4385_v12 = vld [vmem:[%s6206_s1 + $0x5ac] ss:$16 sps:$4 sm:$0xff]   ;;  %v4383_v14 = vld [vmem:[%s6206_s1 + $0x5a8] ss:$16 sps:$4 sm:$0xff]  }
  0x81   :  { %1491 = vmatprep.subr.bf16.mxu1 %v4301_v15  ;;  %v4388_v15 = vld [vmem:[%s6206_s1 + $0x5e4] ss:$16 sps:$4 sm:$0xff]  }
  0x82   :  { %1330 = vmatmul.mubr.bf16.vlgmr.msra.gmra.mrb[0].mxu0 %v49_v17 }
  0x83   :  { %1339 = vmatpush1.bf16.msra.mxu0 %v4296_v16  ;;  %1370 = vmatprep.mubr.bf16.mxu0 %v52_v22  ;;  %v4391_v16 = vld [vmem:[%s6206_s1 + $0x5cc] ss:$16 sps:$4 sm:$0xff]  }
  0x84   :  { %1492 = vmatpush1.bf16.msra.mxu1 %v4299_v18  ;;  %1340 = vmatprep.subr.bf16.mxu0 %v4304_v19  ;;  %v4389_v18 = vld [vmem:[%s6206_s1 + $0x5c8] ss:$16 sps:$4 sm:$0xff]   ;;  %v44_v19 = vld [vmem:[%s6205_s0 + $0x20] sm:$0xff] }
  0x85   :  { %1502 = vmatprep.subr.bf16.mxu1 %v4307_v20  ;;  %v4394_v20 = vld [vmem:[%s6206_s1 + $0x5ec] ss:$16 sps:$4 sm:$0xff]  }
  0x87   :  { %1494 = vmatmul.mubr.bf16.vlgmr.msra.gmra.mrb[4].mxu1 %v49_v17  ;;  %1341 = vmatpush1.bf16.msra.mxu0 %v4302_v23  ;;  %v4386_v17 = vld [vmem:[%s6206_s1 + $0x5e0] ss:$16 sps:$4 sm:$0xff]  }
  0x88   :  { %1503 = vmatpush1.bf16.msra.mxu1 %v4305_v24  ;;  %1342 = vmatprep.subr.bf16.mxu0 %v4310_v25  ;;  %v4399_v23 = vld [vmem:[%s6208_s3] sm:$0xff]   ;;  %v51_v24 = vpack.c.bf16 %v44_v19, %v44_v19  ;;  %v4397_v25 = vld [vmem:[%s6206_s1 + $0x60c] ss:$16 sps:$4 sm:$0xff]  }
  0x89   :  { %1504 = vmatprep.subr.bf16.mxu1 %v4313_v26  ;;  %1534 = vmatprep.mubr.bf16.mxu1 %v52_v22  ;;  %v4392_v22 = vld [vmem:[%s6206_s1 + $0x5e8] ss:$16 sps:$4 sm:$0xff]  }
  0x8a   :  { %v4400_v26 = vld [vmem:[%s6208_s3 + $0x48] sm:$0xff]  }
  0x8b   :  { %1343 = vmatpush1.bf16.msra.mxu0 %v4308_v27  ;;  %v4395_v27 = vld [vmem:[%s6206_s1 + $0x608] ss:$16 sps:$4 sm:$0xff]  }
  0x8c   :  { %1505 = vmatpush1.bf16.msra.mxu1 %v4311_v28  ;;  %1344 = vmatprep.subr.bf16.mxu0 %v4316_v29  ;;  %v4401_v28 = vld [vmem:[%s6208_s3 + $0x8] sm:$0xff]   ;;  %v4402_v29 = vld [vmem:[%s6208_s3 + $0x50] sm:$0xff]  }
  0x8d   :  { %1506 = vmatprep.subr.bf16.mxu1 %v4319_v30  ;;  %v4403_v30 = vld [vmem:[%s6208_s3 + $0x10] sm:$0xff]  }
  0x8f   :  { %1345 = vmatpush1.bf16.msra.mxu0 %v4314_v31  ;;  %v4405_v31 = vld [vmem:[%s6208_s3 + $0x58] sm:$0xff]  }
  0x90   :  { %1507 = vmatpush1.bf16.msra.mxu1 %v4317_v32  ;;  %1346 = vmatprep.subr.bf16.mxu0 %v4322_v33  ;;  %v4406_v32 = vld [vmem:[%s6208_s3 + $0x18] sm:$0xff]   ;;  %v4408_v33 = vld [vmem:[%s6208_s3 + $0x60] sm:$0xff]  }
  0x91   :  { %1508 = vmatprep.subr.bf16.mxu1 %v4325_v34  ;;  %v4404_v34 = vld [vmem:[%s6208_s3 + $0x80] sm:$0xff]  }
  0x93   :  { %1347 = vmatpush1.bf16.msra.mxu0 %v4320_v35  ;;  %v4409_v35 = vld [vmem:[%s6208_s3 + $0x20] sm:$0xff]  }
  0x94   :  { %1509 = vmatpush1.bf16.msra.mxu1 %v4323_v36  ;;  %1348 = vmatprep.subr.bf16.mxu0 %v4328_v37  ;;  %v4411_v36 = vld [vmem:[%s6208_s3 + $0x68] sm:$0xff]  }
  0x95   :  { %1510 = vmatprep.subr.bf16.mxu1 %v4331_v38  ;;  %v4407_v37 = vld [vmem:[%s6208_s3 + $0x88] sm:$0xff]   ;;  %v4410_v38 = vld [vmem:[%s6208_s3 + $0x90] sm:$0xff]  }
  0x97   :  { %1349 = vmatpush1.bf16.msra.mxu0 %v4326_v39 }
  0x98   :  { %1511 = vmatpush1.bf16.msra.mxu1 %v4329_v40  ;;  %1350 = vmatprep.subr.bf16.mxu0 %v4334_v41 }
  0x99   :  { %1512 = vmatprep.subr.bf16.mxu1 %v4337_v42 }
  0x9b   :  { %1351 = vmatpush1.bf16.msra.mxu0 %v4332_v43 }
  0x9c   :  { %1513 = vmatpush1.bf16.msra.mxu1 %v4335_v44  ;;  %1352 = vmatprep.subr.bf16.mxu0 %v4340_v45 }
  0x9d   :  { %1514 = vmatprep.subr.bf16.mxu1 %v4343_v46 }
  0x9f   :  { %1353 = vmatpush1.bf16.msra.mxu0 %v4338_v47 }
  0xa0   :  { %1515 = vmatpush1.bf16.msra.mxu1 %v4341_v48  ;;  %1354 = vmatprep.subr.bf16.mxu0 %v4346_v49 }
  0xa1   :  { %1516 = vmatprep.subr.bf16.mxu1 %v4349_v50 }
  0xa3   :  { %1355 = vmatpush1.bf16.msra.mxu0 %v4344_v51 }
  0xa4   :  { %1517 = vmatpush1.bf16.msra.mxu1 %v4347_v52  ;;  %1356 = vmatprep.subr.bf16.mxu0 %v4352_v53 }
  0xa5   :  { %1518 = vmatprep.subr.bf16.mxu1 %v4355_v54 }
  0xa7   :  { %1357 = vmatpush1.bf16.msra.mxu0 %v4350_v55 }
  0xa8   :  { %1519 = vmatpush1.bf16.msra.mxu1 %v4353_v56  ;;  %1358 = vmatprep.subr.bf16.mxu0 %v4358_v57 }
  0xa9   :  { %1520 = vmatprep.subr.bf16.mxu1 %v4361_v58 }
  0xab   :  { %1359 = vmatpush1.bf16.msra.mxu0 %v4356_v59 }
  0xac   :  { %1521 = vmatpush1.bf16.msra.mxu1 %v4359_v60  ;;  %1360 = vmatprep.subr.bf16.mxu0 %v4364_v61 }
  0xad   :  { %1522 = vmatprep.subr.bf16.mxu1 %v4367_v62 }
  0xaf   :  { %1361 = vmatpush1.bf16.msra.mxu0 %v4362_v63 }
  0xb0   :  { %1523 = vmatpush1.bf16.msra.mxu1 %v4365_v0  ;;  %1362 = vmatprep.subr.bf16.mxu0 %v4370_v1 }
  0xb1   :  { %1524 = vmatprep.subr.bf16.mxu1 %v4373_v3 }
  0xb3   :  { %1363 = vmatpush1.bf16.msra.mxu0 %v4368_v4 }
  0xb4   :  { %1525 = vmatpush1.bf16.msra.mxu1 %v4371_v5  ;;  %1364 = vmatprep.subr.bf16.mxu0 %v4376_v6 }
  0xb5   :  { %1526 = vmatprep.subr.bf16.mxu1 %v4379_v8 }
  0xb7   :  { %1365 = vmatpush1.bf16.msra.mxu0 %v4374_v9 }
  0xb8   :  { %1527 = vmatpush1.bf16.msra.mxu1 %v4377_v10  ;;  %1366 = vmatprep.subr.bf16.mxu0 %v4382_v11 }
  0xb9   :  { %1528 = vmatprep.subr.bf16.mxu1 %v4385_v12 }
  0xbb   :  { %1367 = vmatpush1.bf16.msra.mxu0 %v4380_v13 }
  0xbc   :  { %1529 = vmatpush1.bf16.msra.mxu1 %v4383_v14  ;;  %1368 = vmatprep.subr.bf16.mxu0 %v4388_v15 }
  0xbd   :  { %1530 = vmatprep.subr.bf16.mxu1 %v4391_v16 }
  0xbf   :  { %1369 = vmatpush1.bf16.msra.mxu0 %v4386_v17 }
  0xc0   :  { %1531 = vmatpush1.bf16.msra.mxu1 %v4389_v18  ;;  %4012 = vmatprep.subr.bf16.mxu0 %v4398_v21 }
  0xc1   :  { %1532 = vmatprep.subr.bf16.mxu1 %v4394_v20 }
  0xc2   :  { %1371 = vmatmul.mubr.bf16.vlgmr.msra.gmra.mrb[0].mxu0 %v51_v24 }
  0xc3   :  { %4013 = vmatpush3.bf16.msra.mxu0 %v4399_v23 }
  0xc4   :  { %1533 = vmatpush1.bf16.msra.mxu1 %v4392_v22  ;;  %4014 = vmatprep.subr.bf16.mxu0 %v4400_v26 }
  0xc5   :  { %1543 = vmatprep.subr.bf16.mxu1 %v4397_v25 }
  0xc7   :  { %1535 = vmatmul.mubr.bf16.vlgmr.msra.gmra.mrb[4].mxu1 %v51_v24  ;;  %4015 = vmatpush3.bf16.msra.mxu0 %v4401_v28 }
  0xc8   :  { %1544 = vmatpush1.bf16.msra.mxu1 %v4395_v27  ;;  %1575 = vmatprep.mubr.bf16.mxu1 %v4761_v2 }
  0xc9   :  { %1842 = vmatprep.subr.bf16.mxu1 %v4761_v2  ;;  %4016 = vmatprep.subr.bf16.mxu0 %v4402_v29 }
  0xcb   :  { %4017 = vmatpush3.bf16.msra.mxu0 %v4403_v30 }
  0xcc   :  { %4018 = vmatprep.subr.bf16.mxu0 %v4405_v31 }
  0xcf   :  { %4019 = vmatpush3.bf16.msra.mxu0 %v4406_v32 }
  0xd0   :  { %4020 = vmatprep.subr.bf16.mxu0 %v4408_v33 }
  0xd3   :  { %3793 = vmatmul.mubr.msk.bf16.vlgmr.msra.gmra.mrb[4].mxu1 %vm1252_vm0, %v4844_v7  ;;  %4021 = vmatpush3.bf16.msra.mxu0 %v4409_v35 }
  0xd4   :  { %1843 = vmatpush1.bf16.msra.mxu1 %v4404_v34  ;;  %4022 = vmatprep.subr.bf16.mxu0 %v4411_v36 }
  0xd5   :  { %1844 = vmatprep.subr.bf16.mxu1 %v4761_v2 }
  0xd8   :  { %1845 = vmatpush1.bf16.msra.mxu1 %v4407_v37 }
  0xd9   :  { %1846 = vmatprep.subr.bf16.mxu1 %v4761_v2 }
  0xda   :  { %v1413_v39 = vpop.f32.mrb[0].mxu1 }
  0xdb   :  { %v1415_v40 = vpop.f32.mrb[1].mxu1 }
  0xdc   :  { %v1417_v41 = vpop.f32.mrb[2].mxu1  ;;  %1847 = vmatpush1.bf16.msra.mxu1 %v4410_v38 }
  0xdd   :  { %v1418_v42 = vpop.f32.mrb[3].mxu1  ;;  %1848 = vmatprep.subr.bf16.mxu1 %v4761_v2 }
  0xde   :  { %18 = vsyncpa [#allocation5], 0  ;;  %v4412_v7 = vld [vmem:[%s6208_s3 + $0x28] sm:$0xff]   ;;  %v4413_v43 = vld [vmem:[%s6208_s3 + $0x98] sm:$0xff]   ;;  %v252_v53 = vlaneseq  ;;  %vm3566_vm1 = vcmask 326656   ;;  %vm1955_vm2 = vcmask 1041408  }
  0xdf   :  { %4023 = vmatpush3.bf16.msra.mxu0 %v4412_v7  ;;  %v4414_v44 = vld [vmem:[%s6208_s3 + $0x70] sm:$0xff]   ;;  %v4416_v46 = vld [vmem:[%s6208_s3 + $0xa0] sm:$0xff]   ;;  %v4417_v47 = vld [vmem:[%s6208_s3 + $0x78] sm:$0xff]   ;;  %s4762_s20 = smov 108   ;;  %vm1951_vm3 = vcmask 162816  }
  0xe0   :  { %1849 = vmatpush1.bf16.msra.mxu1 %v4413_v43  ;;  %v4415_v45 = vld [vmem:[%s6208_s3 + $0x30] sm:$0xff]   ;;  %4024 = vmatprep.subr.bf16.mxu0 %v4414_v44  ;;  %v4418_v48 = vld [vmem:[%s6208_s3 + $0x38] sm:$0xff]   ;;  %v4419_v49 = vld [vmem:[%s6208_s3 + $0xa8] sm:$0xff]   ;;  %v5526_v54 = vshrl.u32 %v252_v53, 7 }
  0xe1   :  { %1850 = vmatprep.subr.bf16.mxu1 %v4761_v2  ;;  %v4420_v50 = vld [vmem:[%s6208_s3 + $0xb0] sm:$0xff]   ;;  %v4421_v51 = vld [vmem:[%s6208_s3 + $0xb8] sm:$0xff]   ;;  %v4422_v52 = vld [vmem:[%s6208_s3 + $0xc0] sm:$0xff]  }
  0xe2   :  { %v5529_v55 = vsub.s32 0, %v5526_v54  ;;  %v250_v56 = vld [vmem:[%s6207_s2] sm:$0xf]  ;;  %v5535_v57 = vsub.s32 1, %v5526_v54  ;;  %v5540_v10 = vsub.s32 2, %v5526_v54  ;;  %v5543_v11 = vsub.s32 3, %v5526_v54 }
  0xe3   :  { %4025 = vmatpush3.bf16.msra.mxu0 %v4415_v45  ;;  %v4423_v24 = vld [vmem:[%s6210_s5] ss:$16 sps:$4 sm:$0xff]   ;;  %v4425_v25 = vld [vmem:[%s6210_s5 + $0x4] ss:$16 sps:$4 sm:$0xff]   ;;  %v4430_v43 = vld [vmem:[%s6210_s5 + $0xc] ss:$16 sps:$4 sm:$0xff]  }
  0xe4   :  { %1851 = vmatpush1.bf16.msra.mxu1 %v4416_v46  ;;  %4026 = vmatprep.subr.bf16.mxu0 %v4417_v47  ;;  %v255_v58 = vrot.slane %v250_v56, %v5529_v55  ;;  %v259_v59 = vrot.slane %v250_v56, %v5535_v57  ;;  %v263_v12 = vrot.slane %v250_v56, %v5540_v10  ;;  %v3794_v31 = vld [vmem:[%s6209_s4] ss:$0 sm:$0xff]  ;;  %v4441_v47 = vld [vmem:[%s6212_s7 + $0x3c] ss:$28 sps:$4 sm:$0xff]  }
  0xe5   :  { %1852 = vmatprep.subr.bf16.mxu1 %v4761_v2  ;;  %v267_v13 = vrot.slane %v250_v56, %v5543_v11  ;;  %v4433_v45 = vld [vmem:[%s6212_s7] ss:$28 sps:$4 sm:$0xff]  }
  0xe6   :  { %v4435_v46 = vld [vmem:[%s6212_s7 + $0x4] ss:$28 sps:$4 sm:$0xff]  }
  0xe7   :  { %4027 = vmatpush3.bf16.msra.mxu0 %v4418_v48  ;;  %v4439_v48 = vld [vmem:[%s6212_s7 + $0x38] ss:$28 sps:$4 sm:$0xff]   ;;  %v4459_v53 = vld [vmem:[%s6212_s7 + $0xe4] ss:$28 sps:$4 sm:$0xff]  }
  0xe8   :  { %1853 = vmatpush1.bf16.msra.mxu1 %v4419_v49  ;;  %3198 = vmatprep.subr.bf16.mxu0 %v4435_v46  ;;  %v4447_v49 = vld [vmem:[%s6212_s7 + $0x74] ss:$28 sps:$4 sm:$0xff]   ;;  %v4457_v56 = vld [vmem:[%s6212_s7 + $0xe0] ss:$28 sps:$4 sm:$0xff]  }
  0xe9   :  { %1854 = vmatprep.subr.bf16.mxu1 %v4761_v2  ;;  %v4496_v46 = vld [vmem:[%s6212_s7 + $0x238] ss:$28 sps:$4 sm:$0xff]  }
  0xec   :  { %1855 = vmatpush1.bf16.msra.mxu1 %v4420_v50  ;;  %v4445_v50 = vld [vmem:[%s6212_s7 + $0x70] ss:$28 sps:$4 sm:$0xff]  }
  0xed   :  { %1856 = vmatprep.subr.bf16.mxu1 %v4761_v2 }
  0xf0   :  { %1857 = vmatpush1.bf16.msra.mxu1 %v4421_v51  ;;  %v4453_v51 = vld [vmem:[%s6212_s7 + $0xac] ss:$28 sps:$4 sm:$0xff]  }
  0xf1   :  { %1858 = vmatprep.subr.bf16.mxu1 %v4761_v2 }
  0xf4   :  { %1859 = vmatpush1.bf16.msra.mxu1 %v4422_v52  ;;  %v4451_v52 = vld [vmem:[%s6212_s7 + $0xa8] ss:$28 sps:$4 sm:$0xff]  }
  0xf5   :  { %1968 = vmatprep.subr.bf16.mxu1 %v4425_v25 }
 0x195   :  { %v1372_v60 = vpop.f32.mrb[0].mxu0 }
 0x196   :  { %v4056_v61 = vadd.f32 %v1372_v60, %v255_v58  ;;  %v1374_v62 = vpop.f32.mrb[1].mxu0  ;;  %v4465_v58 = vld [vmem:[%s6212_s7 + $0x11c] ss:$28 sps:$4 sm:$0xff]   ;;  %v4471_v60 = vld [vmem:[%s6212_s7 + $0x154] ss:$28 sps:$4 sm:$0xff]  }
 0x197   :  { %v4058_v63 = vadd.f32 %v1374_v62, %v259_v59  ;;  %v1376_v0 = vpop.f32.mrb[2].mxu0  ;;  %v4463_v59 = vld [vmem:[%s6212_s7 + $0x118] ss:$28 sps:$4 sm:$0xff]   ;;  %v4477_v62 = vld [vmem:[%s6212_s7 + $0x18c] ss:$28 sps:$4 sm:$0xff]  }
 0x198   :  { %v4057_v1 = vadd.f32 %v4056_v61, %v1413_v39  ;;  %v1377_v3 = vpop.f32.mrb[3].mxu0  ;;  %v1897_v39 = vld [vmem:[%s6210_s5 + $0x20] sm:$0x33]  ;;  %v4469_v61 = vld [vmem:[%s6212_s7 + $0x150] ss:$28 sps:$4 sm:$0xff]  }
 0x199   :  { %v4059_v4 = vadd.f32 %v4058_v63, %v1415_v40  ;;  %v3826_v41 = vcombine.high %v1897_v39, %v1897_v39  ;;  %v3825_v42 = vcombine.low %v1897_v39, %v1897_v39  ;;  %v4475_v63 = vld [vmem:[%s6212_s7 + $0x188] ss:$28 sps:$4 sm:$0xff]   ;;  %v4489_v3 = vld [vmem:[%s6212_s7 + $0x1fc] ss:$28 sps:$4 sm:$0xff]  }
 0x19a   :  { %v1584_v5 = vmax.f32 %v4057_v1, 0.0  ;;  %v4483_v0 = vld [vmem:[%s6212_s7 + $0x1c4] ss:$28 sps:$4 sm:$0xff]   ;;  %v4472_v39 = vld [vmem:[%s6212_s7 + $0x158] ss:$28 sps:$4 sm:$0xff]  }
 0x19b   :  { %v1585_v6 = vmax.f32 %v4059_v4, 0.0  ;;  %v1957_v7 = vsel %vm1955_vm2, %v3825_v42, 0  ;;  %v4481_v1 = vld [vmem:[%s6212_s7 + $0x1c0] ss:$28 sps:$4 sm:$0xff]   ;;  %v4487_v4 = vld [vmem:[%s6212_s7 + $0x1f8] ss:$28 sps:$4 sm:$0xff]  }
 0x19c   :  { %v1588_v9 = vpack.c.bf16 %v1584_v5, %v1584_v5  ;;  %v4495_v5 = vld [vmem:[%s6212_s7 + $0x234] ss:$28 sps:$4 sm:$0xff]   ;;  %v4486_v42 = vld [vmem:[%s6212_s7 + $0x1cc] ss:$28 sps:$4 sm:$0xff]  }
 0x19d   :  { %v1589_v8 = vpack.c.bf16 %v1585_v6, %v1585_v6  ;;  %v4493_v6 = vld [vmem:[%s6212_s7 + $0x230] ss:$28 sps:$4 sm:$0xff]  }
 0x19f   :  { %1834 = vmatprep.mubr.bf16.mxu0 %v1589_v8  ;;  %v4501_v8 = vld [vmem:[%s6212_s7 + $0x26c] ss:$28 sps:$4 sm:$0xff]  }
 0x1a0   :  { %1835 = vmatmul.mubr.bf16.vlgmr.msra.gmra.mrb[4].mxu0 %v1588_v9  ;;  %v4499_v9 = vld [vmem:[%s6212_s7 + $0x268] ss:$28 sps:$4 sm:$0xff]  }
 0x1a1   :  { %3199 = vmatpush1.bf16.msra.mxu0 %v4433_v45  ;;  %v4498_v45 = vld [vmem:[%s6212_s7 + $0x23c] ss:$28 sps:$4 sm:$0xff]  }
 0x1a2   :  { %3200 = vmatprep.subr.bf16.mxu0 %v4441_v47  ;;  %v4504_v47 = vld [vmem:[%s6212_s7 + $0x274] ss:$28 sps:$4 sm:$0xff]  }
 0x1a5   :  { %3201 = vmatpush1.bf16.msra.mxu0 %v4439_v48  ;;  %v4502_v48 = vld [vmem:[%s6212_s7 + $0x270] ss:$28 sps:$4 sm:$0xff]  }
 0x1a6   :  { %v1577_v14 = vpop.f32.mrb[4].mxu1  ;;  %3202 = vmatprep.subr.bf16.mxu0 %v4447_v49  ;;  %v4510_v49 = vld [vmem:[%s6212_s7 + $0x2ac] ss:$28 sps:$4 sm:$0xff]  }
 0x1a7   :  { %v4060_v15 = vadd.f32 %v1577_v14, %v263_v12  ;;  %v1579_v16 = vpop.f32.mrb[5].mxu1  ;;  %v4507_v12 = vld [vmem:[%s6212_s7 + $0x2a4] ss:$28 sps:$4 sm:$0xff]   ;;  %v4513_v14 = vld [vmem:[%s6212_s7 + $0x2dc] ss:$28 sps:$4 sm:$0xff]  }
 0x1a8   :  { %v4061_v17 = vadd.f32 %v1579_v16, %v267_v13  ;;  %v1581_v18 = vpop.f32.mrb[6].mxu1  ;;  %v4505_v13 = vld [vmem:[%s6212_s7 + $0x2a0] ss:$28 sps:$4 sm:$0xff]  }
 0x1a9   :  { %v1586_v19 = vmax.f32 %v4060_v15, 0.0  ;;  %v1582_v20 = vpop.f32.mrb[7].mxu1  ;;  %3203 = vmatpush1.bf16.msra.mxu0 %v4445_v50  ;;  %v4511_v15 = vld [vmem:[%s6212_s7 + $0x2d8] ss:$28 sps:$4 sm:$0xff]   ;;  %v1882_v16 = vld [vmem:[%s6214_s9] sm:$0xff] }
 0x1aa   :  { %v1587_v21 = vmax.f32 %v4061_v17, 0.0  ;;  %3204 = vmatprep.subr.bf16.mxu0 %v4453_v51  ;;  %v4508_v50 = vld [vmem:[%s6212_s7 + $0x2a8] ss:$28 sps:$4 sm:$0xff]  }
 0x1ab   :  { %v1590_v23 = vpack.c.bf16 %v1586_v19, %v1586_v19  ;;  %v1898_v19 = vld [vmem:[%s6210_s5 + $0x28] sm:$0x33]  ;;  %v4516_v51 = vld [vmem:[%s6212_s7 + $0x2e4] ss:$28 sps:$4 sm:$0xff]  }
 0x1ac   :  { %v1591_v22 = vpack.c.bf16 %v1587_v21, %v1587_v21  ;;  %v4428_v21 = vld [vmem:[%s6210_s5 + $0x8] ss:$16 sps:$4 sm:$0xff]  }
 0x1ad   :  { %3205 = vmatpush1.bf16.msra.mxu0 %v4451_v52  ;;  %v4514_v52 = vld [vmem:[%s6212_s7 + $0x2e0] ss:$28 sps:$4 sm:$0xff]  }
 0x1ae   :  { %3820 = vmatprep.mubr.msk.bf16.mxu1 %vm1252_vm0, %v1591_v22  ;;  %3206 = vmatprep.subr.bf16.mxu0 %v4459_v53  ;;  %v4519_v53 = vld [vmem:[%s6212_s7 + $0x314] ss:$28 sps:$4 sm:$0xff]  }
 0x1af   :  { %1875 = vmatmul.mubr.bf16.vlgmr.msra.gmra.mrb[8].mxu1 %v1590_v23  ;;  %v3828_v23 = vcombine.high %v1898_v19, %v1898_v19 }
 0x1b0   :  { %2000 = vmatprep.mubr.bf16.mxu1 %v4761_v2  ;;  %1969 = vmatpush1.bf16.msra.mxu1 %v4423_v24  ;;  %v3827_v24 = vcombine.low %v1898_v19, %v1898_v19  ;;  %v4532_v19 = vld [vmem:[%s6212_s7 + $0x388] ss:$28 sps:$4 sm:$0xff]  }
 0x1b1   :  { %3829 = vmatprep.subr.msk.bf16.mxu1 %vm1955_vm2, %v3826_v41  ;;  %3207 = vmatpush1.bf16.msra.mxu0 %v4457_v56  ;;  %v4478_v41 = vld [vmem:[%s6212_s7 + $0x190] ss:$28 sps:$4 sm:$0xff]   ;;  %v4522_v56 = vld [vmem:[%s6212_s7 + $0x31c] ss:$28 sps:$4 sm:$0xff]  }
 0x1b2   :  { %3208 = vmatprep.subr.bf16.mxu0 %v4465_v58  ;;  %v1963_v25 = vsel %vm1955_vm2, %v3827_v24, 0  ;;  %v4517_v58 = vld [vmem:[%s6212_s7 + $0x310] ss:$28 sps:$4 sm:$0xff]  }
 0x1b4   :  { %1971 = vmatpush1.bf16.msra.mxu1 %v1957_v7  ;;  %v4484_v7 = vld [vmem:[%s6212_s7 + $0x1c8] ss:$28 sps:$4 sm:$0xff]  }
 0x1b5   :  { %2009 = vmatprep.subr.bf16.mxu1 %v4430_v43  ;;  %3209 = vmatpush1.bf16.msra.mxu0 %v4463_v59  ;;  %v4492_v43 = vld [vmem:[%s6212_s7 + $0x204] ss:$28 sps:$4 sm:$0xff]   ;;  %v4520_v59 = vld [vmem:[%s6212_s7 + $0x318] ss:$28 sps:$4 sm:$0xff]  }
 0x1b6   :  { %3210 = vmatprep.subr.bf16.mxu0 %v4471_v60  ;;  %v4525_v60 = vld [vmem:[%s6212_s7 + $0x34c] ss:$28 sps:$4 sm:$0xff]  }
 0x1b9   :  { %3211 = vmatpush1.bf16.msra.mxu0 %v4469_v61  ;;  %v4528_v61 = vld [vmem:[%s6212_s7 + $0x354] ss:$28 sps:$4 sm:$0xff]  }
 0x1ba   :  { %3212 = vmatprep.subr.bf16.mxu0 %v4477_v62  ;;  %v4523_v62 = vld [vmem:[%s6212_s7 + $0x348] ss:$28 sps:$4 sm:$0xff]  }
 0x1bd   :  { %3213 = vmatpush1.bf16.msra.mxu0 %v4475_v63  ;;  %v4526_v63 = vld [vmem:[%s6212_s7 + $0x350] ss:$28 sps:$4 sm:$0xff]  }
 0x1be   :  { %3214 = vmatprep.subr.bf16.mxu0 %v4483_v0  ;;  %v4531_v0 = vld [vmem:[%s6212_s7 + $0x384] ss:$28 sps:$4 sm:$0xff]  }
 0x1c1   :  { %3215 = vmatpush1.bf16.msra.mxu0 %v4481_v1  ;;  %v4534_v1 = vld [vmem:[%s6212_s7 + $0x38c] ss:$28 sps:$4 sm:$0xff]  }
 0x1c2   :  { %3216 = vmatprep.subr.bf16.mxu0 %v4489_v3  ;;  %v5784_v3 = vld [vmem:[%s6211_s6] sm:$0xf] }
 0x1c5   :  { %3217 = vmatpush1.bf16.msra.mxu0 %v4487_v4  ;;  %v1904_v4 = vrot.slane %v5784_v3, %v5529_v55 }
 0x1c6   :  { %3218 = vmatprep.subr.bf16.mxu0 %v4495_v5  ;;  %v1908_v5 = vrot.slane %v5784_v3, %v5535_v57 }
 0x1c9   :  { %3219 = vmatpush1.bf16.msra.mxu0 %v4493_v6 }
 0x1ca   :  { %3220 = vmatprep.subr.bf16.mxu0 %v4501_v8 }
 0x1cd   :  { %3221 = vmatpush1.bf16.msra.mxu0 %v4499_v9 }
 0x1ce   :  { %3222 = vmatprep.subr.bf16.mxu0 %v4507_v12 }
 0x1d1   :  { %3223 = vmatpush1.bf16.msra.mxu0 %v4505_v13 }
 0x1d2   :  { %3224 = vmatprep.subr.bf16.mxu0 %v4513_v14 }
 0x1d5   :  { %3225 = vmatpush1.bf16.msra.mxu0 %v4511_v15 }
 0x1d6   :  { %3226 = vmatprep.subr.bf16.mxu0 %v4519_v53  ;;  %v4573_v53 = vld [vmem:[%s6212_s7 + $0x50c] ss:$28 sps:$4 sm:$0xff]  }
 0x1d9   :  { %3227 = vmatpush1.bf16.msra.mxu0 %v4517_v58  ;;  %v4571_v58 = vld [vmem:[%s6212_s7 + $0x508] ss:$28 sps:$4 sm:$0xff]  }
 0x1da   :  { %3228 = vmatprep.subr.bf16.mxu0 %v4525_v60 }
 0x1dd   :  { %3229 = vmatpush1.bf16.msra.mxu0 %v4523_v62  ;;  %v4582_v62 = vld [vmem:[%s6212_s7 + $0x54c] ss:$28 sps:$4 sm:$0xff]  }
 0x1de   :  { %3239 = vmatprep.subr.bf16.mxu0 %v4531_v0  ;;  %v4580_v0 = vld [vmem:[%s6212_s7 + $0x548] ss:$28 sps:$4 sm:$0xff]  }
 0x273   :  { %v4028_v26 = vpop.f32.mrb[4].mxu0 }
 0x274   :  { %v4029_v27 = vpop.f32.mrb[5].mxu0 }
 0x275   :  { %v4030_v28 = vadd.f32 %v4029_v27, %v4028_v26  ;;  %v4031_v29 = vpop.f32.mrb[6].mxu0  ;;  %v4438_v26 = vld [vmem:[%s6212_s7 + $0xc] ss:$28 sps:$4 sm:$0xff]  }
 0x276   :  { %v4032_v30 = vpop.f32.mrb[7].mxu0  ;;  %v4436_v27 = vld [vmem:[%s6212_s7 + $0x8] ss:$28 sps:$4 sm:$0xff]   ;;  %v4442_v29 = vld [vmem:[%s6212_s7 + $0x40] ss:$28 sps:$4 sm:$0xff]  }
 0x277   :  { %v1837_v32 = vadd.f32 %v4030_v28, %v3794_v31  ;;  %v4444_v28 = vld [vmem:[%s6212_s7 + $0x44] ss:$28 sps:$4 sm:$0xff]   ;;  %v4450_v30 = vld [vmem:[%s6212_s7 + $0x7c] ss:$28 sps:$4 sm:$0xff]  }
 0x278   :  { %v4448_v31 = vld [vmem:[%s6212_s7 + $0x78] ss:$28 sps:$4 sm:$0xff]  }
 0x282   :  { %v1876_v33 = vpop.f32.mrb[8].mxu1 }
 0x283   :  { %v5558_v34 = vadd.f32 %v1876_v33, %v1837_v32  ;;  %v1878_v35 = vpop.f32.mrb[9].mxu1  ;;  %v4456_v32 = vld [vmem:[%s6212_s7 + $0xb4] ss:$28 sps:$4 sm:$0xff]  }
 0x284   :  { %v1879_v36 = vpop.f32.mrb[10].mxu1  ;;  %v4454_v33 = vld [vmem:[%s6212_s7 + $0xb0] ss:$28 sps:$4 sm:$0xff]   ;;  %v4460_v35 = vld [vmem:[%s6212_s7 + $0xe8] ss:$28 sps:$4 sm:$0xff]  }
 0x285   :  { %v1883_v37 = vmul.f32 0.5, %v5558_v34  ;;  %v1880_v38 = vpop.f32.mrb[11].mxu1  ;;  %3567 = vst.msk [vmem:[#allocation4] sm:$0xff] %vm3566_vm1, %v5558_v34  ;;  %v4468_v36 = vld [vmem:[%s6212_s7 + $0x124] ss:$28 sps:$4 sm:$0xff]  }
 0x286   :  { %v4474_v38 = vld [vmem:[%s6212_s7 + $0x15c] ss:$28 sps:$4 sm:$0xff]  }
 0x287   :  { %v1884_v40 = vmul.f32 1.442695, %v1883_v37  ;;  %v4466_v37 = vld [vmem:[%s6212_s7 + $0x120] ss:$28 sps:$4 sm:$0xff]  }
 0x289   :  { %4683 = vpow2.f32 %v1884_v40  ;;  %v4480_v40 = vld [vmem:[%s6212_s7 + $0x194] ss:$28 sps:$4 sm:$0xff]  }
 0x293   :  { %v4684_v44 = vpop.eup %4683 }
 0x294   :  { %1887 = vrot.lane.b32.xlu0 %v4684_v44, %s4762_s20  ;;  %v4490_v44 = vld [vmem:[%s6212_s7 + $0x200] ss:$28 sps:$4 sm:$0xff]  }
 0x306   :  { %v1888_v17 = vpop.permute.xlu0 %1887 }
 0x307   :  { %v1890_v18 = vmul.f32 %v1888_v17, %v1882_v16 }
 0x309   :  { %v1891_v20 = vadd.f32 %v1890_v18, %v5558_v34  ;;  %v4462_v34 = vld [vmem:[%s6212_s7 + $0xec] ss:$28 sps:$4 sm:$0xff]   ;;  %v4529_v18 = vld [vmem:[%s6212_s7 + $0x380] ss:$28 sps:$4 sm:$0xff]  }
 0x30b   :  { %v1892_v22 = vpack.c.bf16 %v1891_v20, %v1891_v20  ;;  %v1916_v20 = vrot.slane %v5784_v3, %v5543_v11 }
 0x30d   :  { %3830 = vmatmul.mubr.msk.bf16.vlgmr.msra.gmra.mrb[12].mxu1 %vm1951_vm3, %v1892_v22 }
 0x30e   :  { %2010 = vmatpush1.bf16.msra.mxu1 %v4428_v21  ;;  %2041 = vmatprep.mubr.bf16.mxu1 %v4761_v2 }
 0x30f   :  { %3831 = vmatprep.subr.msk.bf16.mxu1 %vm1955_vm2, %v3828_v23  ;;  %v4540_v23 = vld [vmem:[%s6212_s7 + $0x3c4] ss:$28 sps:$4 sm:$0xff]  }
 0x312   :  { %2012 = vmatpush1.bf16.msra.mxu1 %v1963_v25 }
 0x313   :  { %3280 = vmatprep.subr.bf16.mxu1 %v4438_v26 }
 0x315   :  { %3832 = vmatmul.mubr.msk.bf16.vlgmr.msra.gmra.mrb[16].mxu1 %vm1951_vm3, %v1892_v22  ;;  %v4537_v22 = vld [vmem:[%s6212_s7 + $0x3bc] ss:$28 sps:$4 sm:$0xff]  }
 0x316   :  { %3281 = vmatpush1.bf16.msra.mxu1 %v4436_v27 }
 0x317   :  { %3282 = vmatprep.subr.bf16.mxu1 %v4444_v28  ;;  %v4535_v28 = vld [vmem:[%s6212_s7 + $0x3b8] ss:$28 sps:$4 sm:$0xff]  }
 0x31a   :  { %3283 = vmatpush1.bf16.msra.mxu1 %v4442_v29  ;;  %v4538_v29 = vld [vmem:[%s6212_s7 + $0x3c0] ss:$28 sps:$4 sm:$0xff]  }
 0x31b   :  { %3284 = vmatprep.subr.bf16.mxu1 %v4450_v30 }
 0x31e   :  { %3285 = vmatpush1.bf16.msra.mxu1 %v4448_v31  ;;  %v4543_v31 = vld [vmem:[%s6212_s7 + $0x3f4] ss:$28 sps:$4 sm:$0xff]  }
 0x31f   :  { %3286 = vmatprep.subr.bf16.mxu1 %v4456_v32  ;;  %v4546_v32 = vld [vmem:[%s6212_s7 + $0x3fc] ss:$28 sps:$4 sm:$0xff]  }
 0x322   :  { %3287 = vmatpush1.bf16.msra.mxu1 %v4454_v33 }
 0x323   :  { %3288 = vmatprep.subr.bf16.mxu1 %v4462_v34 }
 0x326   :  { %3289 = vmatpush1.bf16.msra.mxu1 %v4460_v35  ;;  %v4541_v35 = vld [vmem:[%s6212_s7 + $0x3f0] ss:$28 sps:$4 sm:$0xff]  }
 0x327   :  { %3290 = vmatprep.subr.bf16.mxu1 %v4468_v36  ;;  %v4544_v36 = vld [vmem:[%s6212_s7 + $0x3f8] ss:$28 sps:$4 sm:$0xff]  }
 0x32a   :  { %3291 = vmatpush1.bf16.msra.mxu1 %v4466_v37  ;;  %v4549_v37 = vld [vmem:[%s6212_s7 + $0x42c] ss:$28 sps:$4 sm:$0xff]  }
 0x32b   :  { %3292 = vmatprep.subr.bf16.mxu1 %v4474_v38  ;;  %v4552_v38 = vld [vmem:[%s6212_s7 + $0x434] ss:$28 sps:$4 sm:$0xff]  }
 0x32e   :  { %3293 = vmatpush1.bf16.msra.mxu1 %v4472_v39  ;;  %v4547_v39 = vld [vmem:[%s6212_s7 + $0x428] ss:$28 sps:$4 sm:$0xff]  }
 0x32f   :  { %3294 = vmatprep.subr.bf16.mxu1 %v4480_v40  ;;  %v4550_v40 = vld [vmem:[%s6212_s7 + $0x430] ss:$28 sps:$4 sm:$0xff]  }
 0x332   :  { %3295 = vmatpush1.bf16.msra.mxu1 %v4478_v41  ;;  %v4555_v41 = vld [vmem:[%s6212_s7 + $0x464] ss:$28 sps:$4 sm:$0xff]  }
 0x333   :  { %3296 = vmatprep.subr.bf16.mxu1 %v4486_v42  ;;  %v4558_v42 = vld [vmem:[%s6212_s7 + $0x46c] ss:$28 sps:$4 sm:$0xff]  }
 0x336   :  { %3297 = vmatpush1.bf16.msra.mxu1 %v4484_v7  ;;  %v4553_v7 = vld [vmem:[%s6212_s7 + $0x460] ss:$28 sps:$4 sm:$0xff]  }
 0x337   :  { %3298 = vmatprep.subr.bf16.mxu1 %v4492_v43  ;;  %v4556_v43 = vld [vmem:[%s6212_s7 + $0x468] ss:$28 sps:$4 sm:$0xff]  }
 0x33a   :  { %3299 = vmatpush1.bf16.msra.mxu1 %v4490_v44  ;;  %v4561_v44 = vld [vmem:[%s6212_s7 + $0x49c] ss:$28 sps:$4 sm:$0xff]  }
 0x33b   :  { %3300 = vmatprep.subr.bf16.mxu1 %v4498_v45  ;;  %v4564_v45 = vld [vmem:[%s6212_s7 + $0x4a4] ss:$28 sps:$4 sm:$0xff]  }
 0x33e   :  { %3301 = vmatpush1.bf16.msra.mxu1 %v4496_v46  ;;  %v4559_v46 = vld [vmem:[%s6212_s7 + $0x498] ss:$28 sps:$4 sm:$0xff]  }
 0x33f   :  { %3302 = vmatprep.subr.bf16.mxu1 %v4504_v47  ;;  %v4562_v47 = vld [vmem:[%s6212_s7 + $0x4a0] ss:$28 sps:$4 sm:$0xff]  }
 0x342   :  { %3303 = vmatpush1.bf16.msra.mxu1 %v4502_v48  ;;  %v4567_v48 = vld [vmem:[%s6212_s7 + $0x4d4] ss:$28 sps:$4 sm:$0xff]  }
 0x343   :  { %3304 = vmatprep.subr.bf16.mxu1 %v4510_v49  ;;  %v4570_v49 = vld [vmem:[%s6212_s7 + $0x4dc] ss:$28 sps:$4 sm:$0xff]  }
 0x346   :  { %3305 = vmatpush1.bf16.msra.mxu1 %v4508_v50  ;;  %v4565_v50 = vld [vmem:[%s6212_s7 + $0x4d0] ss:$28 sps:$4 sm:$0xff]  }
 0x347   :  { %3306 = vmatprep.subr.bf16.mxu1 %v4516_v51  ;;  %v4568_v51 = vld [vmem:[%s6212_s7 + $0x4d8] ss:$28 sps:$4 sm:$0xff]  }
 0x34a   :  { %3307 = vmatpush1.bf16.msra.mxu1 %v4514_v52  ;;  %v1912_v52 = vrot.slane %v5784_v3, %v5540_v10  ;;  %v4585_v3 = vld [vmem:[%s6212_s7 + $0x14] ss:$28 sps:$4 sm:$0xff]  }
 0x34b   :  { %3308 = vmatprep.subr.bf16.mxu1 %v4522_v56  ;;  %v4576_v56 = vld [vmem:[%s6212_s7 + $0x514] ss:$28 sps:$4 sm:$0xff]  }
 0x34e   :  { %3309 = vmatpush1.bf16.msra.mxu1 %v4520_v59  ;;  %v4574_v59 = vld [vmem:[%s6212_s7 + $0x510] ss:$28 sps:$4 sm:$0xff]  }
 0x34f   :  { %3310 = vmatprep.subr.bf16.mxu1 %v4528_v61  ;;  %v4579_v61 = vld [vmem:[%s6212_s7 + $0x544] ss:$28 sps:$4 sm:$0xff]  }
 0x352   :  { %3311 = vmatpush1.bf16.msra.mxu1 %v4526_v63  ;;  %v4577_v63 = vld [vmem:[%s6212_s7 + $0x540] ss:$28 sps:$4 sm:$0xff]  }
 0x353   :  { %3321 = vmatprep.subr.bf16.mxu1 %v4534_v1 }
 0x3e0   :  { %v2002_v6 = vpop.f32.mrb[12].mxu1 }
 0x3e1   :  { %v2003_v8 = vadd.f32 %v2002_v6, %v1904_v4  ;;  %v2004_v9 = vpop.f32.mrb[13].mxu1  ;;  %v4586_v4 = vld [vmem:[%s6212_s7 + $0x1d8] ss:$28 sps:$4 sm:$0xff]  }
 0x3e2   :  { %v2005_v12 = vadd.f32 %v2004_v9, %v1908_v5  ;;  %v2006_v13 = vpop.f32.mrb[14].mxu1  ;;  %v4583_v5 = vld [vmem:[%s6212_s7 + $0x10] ss:$28 sps:$4 sm:$0xff]  }
 0x3e3   :  { %v2050_v14 = vmax.f32 %v2003_v8, 0.0  ;;  %v2007_v15 = vpop.f32.mrb[15].mxu1  ;;  %v4587_v8 = vld [vmem:[%s6212_s7 + $0x18] ss:$28 sps:$4 sm:$0xff]   ;;  %v4590_v9 = vld [vmem:[%s6212_s7 + $0x4c] ss:$28 sps:$4 sm:$0xff]  }
 0x3e4   :  { %v2051_v16 = vmax.f32 %v2005_v12, 0.0  ;;  %v4591_v12 = vld [vmem:[%s6212_s7 + $0x210] ss:$28 sps:$4 sm:$0xff]   ;;  %v4588_v13 = vld [vmem:[%s6212_s7 + $0x48] ss:$28 sps:$4 sm:$0xff]  }
 0x3e5   :  { %v5800_v21 = vpack.c.bf16 %v2050_v14, %v2050_v14  ;;  %v4592_v14 = vld [vmem:[%s6212_s7 + $0x50] ss:$28 sps:$4 sm:$0xff]   ;;  %v4595_v15 = vld [vmem:[%s6212_s7 + $0x84] ss:$28 sps:$4 sm:$0xff]  }
 0x3e6   :  { %v5790_v17 = vpack.c.bf16 %v2051_v16, %v2051_v16  ;;  %v4596_v16 = vld [vmem:[%s6212_s7 + $0x248] ss:$28 sps:$4 sm:$0xff]  }
 0x3e8   :  { %v5808_v24 = vpop.f32.mrb[16].mxu1  ;;  %3230 = vmatprep.mubr.bf16.mxu0 %v5790_v17  ;;  %3312 = vmatprep.mubr.bf16.mxu1 %v5790_v17 }
 0x3e9   :  { %v2045_v25 = vpop.f32.mrb[17].mxu1  ;;  %3231 = vmatmul.mubr.bf16.vlgmr.msra.gmra.mrb[8].mxu0 %v5800_v21  ;;  %3313 = vmatmul.mubr.bf16.vlgmr.msra.gmra.mrb[20].mxu1 %v5800_v21  ;;  %v2044_v60 = vadd.f32 %v5808_v24, %v1912_v52  ;;  %v4605_v24 = vld [vmem:[%s6212_s7 + $0xf4] ss:$28 sps:$4 sm:$0xff]  }
 0x3ea   :  { %v2046_v26 = vadd.f32 %v2045_v25, %v1916_v20  ;;  %3240 = vmatpush1.bf16.msra.mxu0 %v4529_v18  ;;  %3322 = vmatpush1.bf16.msra.mxu1 %v4532_v19  ;;  %v2047_v27 = vpop.f32.mrb[18].mxu1  ;;  %v4593_v18 = vld [vmem:[%s6212_s7 + $0x80] ss:$28 sps:$4 sm:$0xff]   ;;  %v4606_v25 = vld [vmem:[%s6212_s7 + $0x2b8] ss:$28 sps:$4 sm:$0xff]  }
 0x3eb   :  { %v2048_v30 = vpop.f32.mrb[19].mxu1  ;;  %3241 = vmatprep.subr.bf16.mxu0 %v4537_v22  ;;  %3323 = vmatprep.subr.bf16.mxu1 %v4540_v23  ;;  %v2052_v1 = vmax.f32 %v2044_v60, 0.0  ;;  %v4600_v19 = vld [vmem:[%s6212_s7 + $0xbc] ss:$28 sps:$4 sm:$0xff]   ;;  %v4641_v52 = vld [vmem:[%s6212_s7 + $0x2b4] ss:$28 sps:$4 sm:$0xff]  }
 0x3ec   :  { %v2053_v33 = vmax.f32 %v2046_v26, 0.0  ;;  %v4601_v20 = vld [vmem:[%s6212_s7 + $0x280] ss:$28 sps:$4 sm:$0xff]   ;;  %v4598_v22 = vld [vmem:[%s6212_s7 + $0xb8] ss:$28 sps:$4 sm:$0xff]  }
 0x3ed   :  { %v5922_v6 = vpack.c.bf16 %v2052_v1, %v2052_v1  ;;  %v4602_v23 = vld [vmem:[%s6212_s7 + $0xc0] ss:$28 sps:$4 sm:$0xff]   ;;  %v4603_v26 = vld [vmem:[%s6212_s7 + $0xf0] ss:$28 sps:$4 sm:$0xff]   ;;  %v4607_v27 = vld [vmem:[%s6212_s7 + $0xf8] ss:$28 sps:$4 sm:$0xff]  }
 0x3ee   :  { %v5826_v34 = vpack.c.bf16 %v2053_v33, %v2053_v33  ;;  %3242 = vmatpush1.bf16.msra.mxu0 %v4535_v28  ;;  %3324 = vmatpush1.bf16.msra.mxu1 %v4538_v29  ;;  %v4610_v28 = vld [vmem:[%s6212_s7 + $0x12c] ss:$28 sps:$4 sm:$0xff]   ;;  %v4651_v1 = vld [vmem:[%s6212_s7 + $0x358] ss:$28 sps:$4 sm:$0xff]  }
 0x3ef   :  { %3243 = vmatprep.subr.bf16.mxu0 %v4543_v31  ;;  %3325 = vmatprep.subr.bf16.mxu1 %v4546_v32  ;;  %v4611_v29 = vld [vmem:[%s6212_s7 + $0x2f0] ss:$28 sps:$4 sm:$0xff]   ;;  %v4608_v30 = vld [vmem:[%s6212_s7 + $0x128] ss:$28 sps:$4 sm:$0xff]  }
 0x3f0   :  { %4008 = vmatprep.mubr.msk.bf16.mxu0 %vm1252_vm0, %v5826_v34  ;;  %4009 = vmatprep.mubr.msk.bf16.mxu1 %vm1252_vm0, %v5826_v34  ;;  %v4612_v31 = vld [vmem:[%s6212_s7 + $0x130] ss:$28 sps:$4 sm:$0xff]   ;;  %v4615_v32 = vld [vmem:[%s6212_s7 + $0x164] ss:$28 sps:$4 sm:$0xff]  }
 0x3f1   :  { %v4616_v33 = vld [vmem:[%s6212_s7 + $0x328] ss:$28 sps:$4 sm:$0xff]   ;;  %v4646_v60 = vld [vmem:[%s6212_s7 + $0x4b0] ss:$28 sps:$4 sm:$0xff]  }
 0x3f2   :  { %3244 = vmatpush1.bf16.msra.mxu0 %v4541_v35  ;;  %3326 = vmatpush1.bf16.msra.mxu1 %v4544_v36  ;;  %v4613_v35 = vld [vmem:[%s6212_s7 + $0x160] ss:$28 sps:$4 sm:$0xff]   ;;  %v4617_v36 = vld [vmem:[%s6212_s7 + $0x168] ss:$28 sps:$4 sm:$0xff]  }
 0x3f3   :  { %3245 = vmatprep.subr.bf16.mxu0 %v4549_v37  ;;  %3327 = vmatprep.subr.bf16.mxu1 %v4552_v38  ;;  %v4620_v37 = vld [vmem:[%s6212_s7 + $0x19c] ss:$28 sps:$4 sm:$0xff]  }
 0x3f4   :  { %v4621_v38 = vld [vmem:[%s6212_s7 + $0x360] ss:$28 sps:$4 sm:$0xff]  }
 0x3f6   :  { %3246 = vmatpush1.bf16.msra.mxu0 %v4547_v39  ;;  %3328 = vmatpush1.bf16.msra.mxu1 %v4550_v40  ;;  %v4618_v39 = vld [vmem:[%s6212_s7 + $0x198] ss:$28 sps:$4 sm:$0xff]   ;;  %v4622_v40 = vld [vmem:[%s6212_s7 + $0x1a0] ss:$28 sps:$4 sm:$0xff]  }
 0x3f7   :  { %3247 = vmatprep.subr.bf16.mxu0 %v4555_v41  ;;  %3329 = vmatprep.subr.bf16.mxu1 %v4558_v42  ;;  %v4625_v41 = vld [vmem:[%s6212_s7 + $0x1d4] ss:$28 sps:$4 sm:$0xff]  }
 0x3f8   :  { %v4623_v42 = vld [vmem:[%s6212_s7 + $0x1d0] ss:$28 sps:$4 sm:$0xff]  }
 0x3fa   :  { %3248 = vmatpush1.bf16.msra.mxu0 %v4553_v7  ;;  %3330 = vmatpush1.bf16.msra.mxu1 %v4556_v43  ;;  %v4626_v7 = vld [vmem:[%s6212_s7 + $0x398] ss:$28 sps:$4 sm:$0xff]   ;;  %v4629_v43 = vld [vmem:[%s6212_s7 + $0x20c] ss:$28 sps:$4 sm:$0xff]  }
 0x3fb   :  { %3249 = vmatprep.subr.bf16.mxu0 %v4561_v44  ;;  %3331 = vmatprep.subr.bf16.mxu1 %v4564_v45  ;;  %v4627_v44 = vld [vmem:[%s6212_s7 + $0x208] ss:$28 sps:$4 sm:$0xff]   ;;  %v4630_v45 = vld [vmem:[%s6212_s7 + $0x3d0] ss:$28 sps:$4 sm:$0xff]  }
 0x3fe   :  { %3250 = vmatpush1.bf16.msra.mxu0 %v4559_v46  ;;  %3332 = vmatpush1.bf16.msra.mxu1 %v4562_v47  ;;  %v4633_v46 = vld [vmem:[%s6212_s7 + $0x244] ss:$28 sps:$4 sm:$0xff]  }
 0x3ff   :  { %3251 = vmatprep.subr.bf16.mxu0 %v4567_v48  ;;  %3333 = vmatprep.subr.bf16.mxu1 %v4570_v49  ;;  %v4631_v47 = vld [vmem:[%s6212_s7 + $0x240] ss:$28 sps:$4 sm:$0xff]   ;;  %v4634_v48 = vld [vmem:[%s6212_s7 + $0x408] ss:$28 sps:$4 sm:$0xff]  }
 0x400   :  { %v4637_v49 = vld [vmem:[%s6212_s7 + $0x27c] ss:$28 sps:$4 sm:$0xff]  }
 0x402   :  { %3252 = vmatpush1.bf16.msra.mxu0 %v4565_v50  ;;  %3334 = vmatpush1.bf16.msra.mxu1 %v4568_v51  ;;  %v4635_v50 = vld [vmem:[%s6212_s7 + $0x278] ss:$28 sps:$4 sm:$0xff]   ;;  %v4638_v51 = vld [vmem:[%s6212_s7 + $0x440] ss:$28 sps:$4 sm:$0xff]  }
 0x403   :  { %3253 = vmatprep.subr.bf16.mxu0 %v4573_v53  ;;  %3335 = vmatprep.subr.bf16.mxu1 %v4576_v56  ;;  %v4639_v53 = vld [vmem:[%s6212_s7 + $0x2b0] ss:$28 sps:$4 sm:$0xff]   ;;  %v4642_v56 = vld [vmem:[%s6212_s7 + $0x478] ss:$28 sps:$4 sm:$0xff]  }
 0x406   :  { %3254 = vmatpush1.bf16.msra.mxu0 %v4571_v58  ;;  %3336 = vmatpush1.bf16.msra.mxu1 %v4574_v59  ;;  %v4645_v58 = vld [vmem:[%s6212_s7 + $0x2ec] ss:$28 sps:$4 sm:$0xff]  }
 0x407   :  { %3255 = vmatprep.subr.bf16.mxu0 %v4579_v61  ;;  %3337 = vmatprep.subr.bf16.mxu1 %v4582_v62  ;;  %v4643_v59 = vld [vmem:[%s6212_s7 + $0x2e8] ss:$28 sps:$4 sm:$0xff]   ;;  %v4647_v62 = vld [vmem:[%s6212_s7 + $0x320] ss:$28 sps:$4 sm:$0xff]  }
 0x408   :  { %v4649_v61 = vld [vmem:[%s6212_s7 + $0x324] ss:$28 sps:$4 sm:$0xff]  }
 0x40a   :  { %3256 = vmatpush1.bf16.msra.mxu0 %v4577_v63  ;;  %3338 = vmatpush1.bf16.msra.mxu1 %v4580_v0  ;;  %v4650_v63 = vld [vmem:[%s6212_s7 + $0x4e8] ss:$28 sps:$4 sm:$0xff]   ;;  %v4653_v0 = vld [vmem:[%s6212_s7 + $0x35c] ss:$28 sps:$4 sm:$0xff]  }
 0x40b   :  { %3362 = vmatprep.subr.bf16.mxu0 %v4585_v3  ;;  %4034 = vmatprep.subr.bf16.mxu1 %v4586_v4  ;;  %v4654_v3 = vld [vmem:[%s6212_s7 + $0x520] ss:$28 sps:$4 sm:$0xff]   ;;  %v4657_v4 = vld [vmem:[%s6212_s7 + $0x394] ss:$28 sps:$4 sm:$0xff]  }
 0x40d   :  { %3272 = vmatmul.mubr.bf16.vlgmr.msra.gmra.mrb[8].mxu0 %v5922_v6  ;;  %3354 = vmatmul.mubr.bf16.vlgmr.msra.gmra.mrb[20].mxu1 %v5922_v6 }
 0x40e   :  { %3363 = vmatpush1.bf16.msra.mxu0 %v4583_v5  ;;  %3394 = vmatprep.mubr.bf16.mxu0 %v5790_v17  ;;  %v4655_v5 = vld [vmem:[%s6212_s7 + $0x390] ss:$28 sps:$4 sm:$0xff]  }
 0x40f   :  { %4035 = vmatpush3.bf16.msra.mxu1 %v4587_v8  ;;  %3476 = vmatprep.mubr.bf16.mxu1 %v5790_v17  ;;  %v4597_v17 = vld [vmem:[%s6212_s7 + $0x88] ss:$28 sps:$4 sm:$0xff]   ;;  %v4658_v8 = vld [vmem:[%s6212_s7 + $0x558] ss:$28 sps:$4 sm:$0xff]  }
 0x410   :  { %3364 = vmatprep.subr.bf16.mxu0 %v4590_v9  ;;  %4036 = vmatprep.subr.bf16.mxu1 %v4591_v12  ;;  %v4661_v9 = vld [vmem:[%s6212_s7 + $0x3cc] ss:$28 sps:$4 sm:$0xff]  }
 0x411   :  { %v4659_v12 = vld [vmem:[%s6212_s7 + $0x3c8] ss:$28 sps:$4 sm:$0xff]  }
 0x412   :  { %3365 = vmatpush1.bf16.msra.mxu0 %v4588_v13  ;;  %v4664_v13 = vld [vmem:[%s6212_s7 + $0x404] ss:$28 sps:$4 sm:$0xff]  }
 0x413   :  { %4037 = vmatpush3.bf16.msra.mxu1 %v4592_v14  ;;  %3366 = vmatprep.subr.bf16.mxu0 %v4595_v15  ;;  %v4670_v14 = vld [vmem:[%s6212_s7 + $0x474] ss:$28 sps:$4 sm:$0xff]  }
 0x414   :  { %4038 = vmatprep.subr.bf16.mxu1 %v4596_v16  ;;  %v4668_v15 = vld [vmem:[%s6212_s7 + $0x470] ss:$28 sps:$4 sm:$0xff]  }
 0x415   :  { %v4673_v16 = vld [vmem:[%s6212_s7 + $0x4ac] ss:$28 sps:$4 sm:$0xff]  }
 0x416   :  { %3367 = vmatpush1.bf16.msra.mxu0 %v4593_v18  ;;  %v4671_v18 = vld [vmem:[%s6212_s7 + $0x4a8] ss:$28 sps:$4 sm:$0xff]  }
 0x417   :  { %4039 = vmatpush3.bf16.msra.mxu1 %v4597_v17  ;;  %3368 = vmatprep.subr.bf16.mxu0 %v4600_v19  ;;  %v4676_v17 = vld [vmem:[%s6212_s7 + $0x4e4] ss:$28 sps:$4 sm:$0xff]  }
 0x418   :  { %4040 = vmatprep.subr.bf16.mxu1 %v4601_v20  ;;  %v4674_v19 = vld [vmem:[%s6212_s7 + $0x4e0] ss:$28 sps:$4 sm:$0xff]  }
 0x419   :  { %v4679_v20 = vld [vmem:[%s6212_s7 + $0x51c] ss:$28 sps:$4 sm:$0xff]  }
 0x41a   :  { %3369 = vmatpush1.bf16.msra.mxu0 %v4598_v22  ;;  %v4677_v22 = vld [vmem:[%s6212_s7 + $0x518] ss:$28 sps:$4 sm:$0xff]  }
 0x41b   :  { %4041 = vmatpush3.bf16.msra.mxu1 %v4602_v23  ;;  %3370 = vmatprep.subr.bf16.mxu0 %v4605_v24  ;;  %v4682_v23 = vld [vmem:[%s6212_s7 + $0x554] ss:$28 sps:$4 sm:$0xff]  }
 0x41c   :  { %4042 = vmatprep.subr.bf16.mxu1 %v4606_v25  ;;  %v4680_v24 = vld [vmem:[%s6212_s7 + $0x550] ss:$28 sps:$4 sm:$0xff]   ;;  %v6164_v25 = vld [vmem:[%s6213_s8] sm:$0x7f] }
 0x41e   :  { %3371 = vmatpush1.bf16.msra.mxu0 %v4603_v26  ;;  %v2263_v26 = vrot.slane %v6164_v25, %v5529_v55 }
 0x41f   :  { %4043 = vmatpush3.bf16.msra.mxu1 %v4607_v27  ;;  %3372 = vmatprep.subr.bf16.mxu0 %v4610_v28  ;;  %v2271_v27 = vrot.slane %v6164_v25, %v5540_v10  ;;  %v2267_v28 = vrot.slane %v6164_v25, %v5535_v57 }
 0x420   :  { %4044 = vmatprep.subr.bf16.mxu1 %v4611_v29  ;;  %v2275_v29 = vrot.slane %v6164_v25, %v5543_v11 }
 0x422   :  { %3373 = vmatpush1.bf16.msra.mxu0 %v4608_v30 }
 0x423   :  { %4045 = vmatpush3.bf16.msra.mxu1 %v4612_v31  ;;  %3374 = vmatprep.subr.bf16.mxu0 %v4615_v32 }
 0x424   :  { %4046 = vmatprep.subr.bf16.mxu1 %v4616_v33 }
 0x426   :  { %3375 = vmatpush1.bf16.msra.mxu0 %v4613_v35 }
 0x427   :  { %4047 = vmatpush3.bf16.msra.mxu1 %v4617_v36  ;;  %3376 = vmatprep.subr.bf16.mxu0 %v4620_v37 }
 0x428   :  { %4048 = vmatprep.subr.bf16.mxu1 %v4621_v38 }
 0x42a   :  { %3377 = vmatpush1.bf16.msra.mxu0 %v4618_v39 }
 0x42b   :  { %4049 = vmatpush3.bf16.msra.mxu1 %v4622_v40  ;;  %3378 = vmatprep.subr.bf16.mxu0 %v4625_v41 }
 0x42c   :  { %3484 = vmatprep.subr.bf16.mxu1 %v4761_v2 }
 0x42e   :  { %3477 = vmatmul.mubr.bf16.vlgmr.msra.gmra.mrb[24].mxu1 %v5800_v21  ;;  %3379 = vmatpush1.bf16.msra.mxu0 %v4623_v42 }
 0x42f   :  { %3485 = vmatpush1.bf16.msra.mxu1 %v4626_v7  ;;  %4011 = vmatprep.mubr.msk.bf16.mxu1 %vm1252_vm0, %v5826_v34 }
 0x430   :  { %3380 = vmatprep.subr.bf16.mxu0 %v4629_v43  ;;  %3486 = vmatprep.subr.bf16.mxu1 %v4761_v2 }
 0x432   :  { %3381 = vmatpush1.bf16.msra.mxu0 %v4627_v44 }
 0x433   :  { %3487 = vmatpush1.bf16.msra.mxu1 %v4630_v45  ;;  %3382 = vmatprep.subr.bf16.mxu0 %v4633_v46 }
 0x434   :  { %3488 = vmatprep.subr.bf16.mxu1 %v4761_v2 }
 0x436   :  { %3383 = vmatpush1.bf16.msra.mxu0 %v4631_v47 }
 0x437   :  { %3489 = vmatpush1.bf16.msra.mxu1 %v4634_v48  ;;  %3384 = vmatprep.subr.bf16.mxu0 %v4637_v49 }
 0x438   :  { %3490 = vmatprep.subr.bf16.mxu1 %v4761_v2 }
 0x43a   :  { %3385 = vmatpush1.bf16.msra.mxu0 %v4635_v50 }
 0x43b   :  { %3491 = vmatpush1.bf16.msra.mxu1 %v4638_v51  ;;  %3386 = vmatprep.subr.bf16.mxu0 %v4641_v52 }
 0x43c   :  { %3492 = vmatprep.subr.bf16.mxu1 %v4761_v2 }
 0x43e   :  { %3387 = vmatpush1.bf16.msra.mxu0 %v4639_v53 }
 0x43f   :  { %3493 = vmatpush1.bf16.msra.mxu1 %v4642_v56  ;;  %3388 = vmatprep.subr.bf16.mxu0 %v4645_v58 }
 0x440   :  { %3494 = vmatprep.subr.bf16.mxu1 %v4761_v2 }
 0x442   :  { %3389 = vmatpush1.bf16.msra.mxu0 %v4643_v59 }
 0x443   :  { %3495 = vmatpush1.bf16.msra.mxu1 %v4646_v60  ;;  %3390 = vmatprep.subr.bf16.mxu0 %v4649_v61 }
 0x444   :  { %3496 = vmatprep.subr.bf16.mxu1 %v4761_v2 }
 0x446   :  { %3391 = vmatpush1.bf16.msra.mxu0 %v4647_v62 }
 0x447   :  { %3497 = vmatpush1.bf16.msra.mxu1 %v4650_v63  ;;  %3392 = vmatprep.subr.bf16.mxu0 %v4653_v0 }
 0x448   :  { %3498 = vmatprep.subr.bf16.mxu1 %v4761_v2 }
 0x44a   :  { %3393 = vmatpush1.bf16.msra.mxu0 %v4651_v1 }
 0x44b   :  { %3499 = vmatpush1.bf16.msra.mxu1 %v4654_v3  ;;  %3403 = vmatprep.subr.bf16.mxu0 %v4657_v4 }
 0x44c   :  { %3500 = vmatprep.subr.bf16.mxu1 %v4761_v2  ;;  %v4662_v2 = vld [vmem:[%s6212_s7 + $0x400] ss:$28 sps:$4 sm:$0xff]  }
 0x44d   :  { %3395 = vmatmul.mubr.bf16.vlgmr.msra.gmra.mrb[12].mxu0 %v5800_v21  ;;  %v4667_v21 = vld [vmem:[%s6212_s7 + $0x43c] ss:$28 sps:$4 sm:$0xff]  }
 0x44e   :  { %3404 = vmatpush1.bf16.msra.mxu0 %v4655_v5  ;;  %4010 = vmatprep.mubr.msk.bf16.mxu0 %vm1252_vm0, %v5826_v34  ;;  %v4665_v34 = vld [vmem:[%s6212_s7 + $0x438] ss:$28 sps:$4 sm:$0xff]   ;;  %s4763_s7 = smov [#allocation4]  }
 0x44f   :  { %3501 = vmatpush1.bf16.msra.mxu1 %v4658_v8  ;;  %3405 = vmatprep.subr.bf16.mxu0 %v4661_v9  ;;  %s3584_s8 = sshll.u32 %s4763_s7, 4  ;;  %s3585_s8 = int_to_ptr.vmem [resolvable:$true] %s3584_s8 }
 0x450   :  { %s4713_s15 = scalar_lea.vmem %s3585_s8, 128  ;;  %p4718_p1 = scmp.lt.s32.totalorder %s3585_s8, %s3585_s8 }
 0x451   :  { %p4714_p0 = scmp.ne.s32.totalorder %s3585_s8, %s4713_s15  ;;  %p4719_p2 = scmp.lt.s32.totalorder %s4713_s15, %s4713_s15 }
 0x452   :  { %3517 = vmatmul.mubr.bf16.vlgmr.msra.gmra.mrb[28].mxu1 %v5922_v6  ;;  %3406 = vmatpush1.bf16.msra.mxu0 %v4659_v12 }
 0x453   :  { %3407 = vmatprep.subr.bf16.mxu0 %v4664_v13  ;;  %p4720_p3 = por %p4719_p2, %p4718_p1 }
 0x455   :  { %p4721_p4 = pnand %p4720_p3, %p4714_p0 }
 0x456   :  { %3408 = vmatpush1.bf16.msra.mxu0 %v4662_v2 }
 0x457   :  { %3409 = vmatprep.subr.bf16.mxu0 %v4667_v21 }
 0x45a   :  { %3410 = vmatpush1.bf16.msra.mxu0 %v4665_v34 }
 0x45b   :  { %3411 = vmatprep.subr.bf16.mxu0 %v4670_v14 }
 0x45e   :  { %3412 = vmatpush1.bf16.msra.mxu0 %v4668_v15 }
 0x45f   :  { %3413 = vmatprep.subr.bf16.mxu0 %v4673_v16 }
 0x462   :  { %3414 = vmatpush1.bf16.msra.mxu0 %v4671_v18 }
 0x463   :  { %3415 = vmatprep.subr.bf16.mxu0 %v4676_v17 }
 0x466   :  { %3416 = vmatpush1.bf16.msra.mxu0 %v4674_v19 }
 0x467   :  { %3417 = vmatprep.subr.bf16.mxu0 %v4679_v20 }
 0x46a   :  { %3418 = vmatpush1.bf16.msra.mxu0 %v4677_v22 }
 0x46b   :  { %3419 = vmatprep.subr.bf16.mxu0 %v4682_v23 }
 0x46e   :  { %3420 = vmatpush1.bf16.msra.mxu0 %v4680_v24 }
 0x471   :  { %3436 = vmatmul.mubr.bf16.vlgmr.msra.gmra.mrb[12].mxu0 %v5922_v6 }
 0x4e0   :  { %v3273_v30 = vpop.f32.mrb[8].mxu0  ;;  %v3355_v31 = vpop.f32.mrb[20].mxu1 }
 0x4e1   :  { %v4062_v6 = vadd.f32 %v3273_v30, %v2263_v26  ;;  %v4064_v32 = vadd.f32 %v3355_v31, %v2271_v27  ;;  %v3275_v33 = vpop.f32.mrb[9].mxu0  ;;  %v3357_v35 = vpop.f32.mrb[21].mxu1 }
 0x4e2   :  { %v4063_v36 = vadd.f32 %v3275_v33, %v2267_v28  ;;  %v4065_v37 = vadd.f32 %v3357_v35, %v2275_v29  ;;  %v3277_v38 = vpop.f32.mrb[10].mxu0  ;;  %v3359_v39 = vpop.f32.mrb[22].mxu1 }
 0x4e3   :  { %v3524_v55 = vsub.f32 0.0, %v4062_v6  ;;  %v3526_v40 = vsub.f32 0.0, %v4064_v32  ;;  %v3278_v41 = vpop.f32.mrb[11].mxu0  ;;  %v3360_v10 = vpop.f32.mrb[23].mxu1 }
 0x4e4   :  { %v3525_v42 = vsub.f32 0.0, %v4063_v36  ;;  %v3527_v7 = vsub.f32 0.0, %v4065_v37 }
 0x4e5   :  { %v3531_v57 = vmul.f32 1.442695, %v3524_v55  ;;  %v3535_v43 = vmul.f32 1.442695, %v3526_v40 }
 0x4e6   :  { %v3533_v11 = vmul.f32 1.442695, %v3525_v42  ;;  %v3537_v44 = vmul.f32 1.442695, %v3527_v7 }
 0x4e7   :  { %4685 = vpow2.f32 %v3531_v57 }
 0x4e8   :  { %4724 = shalt.err (!%p4721_p4)
}
 0x4e9   :  { %s4725_s16 = scalar_lea.hbm %s6216_s11, 128 }
 0x4ea   :  { %p4726_p5 = scmp.ne.s32.totalorder %s6216_s11, %s4725_s16  ;;  %p4729_p6 = scmp.lt.u32.totalorder %s4725_s16, %s6216_s11 }
 0x4ec   :  { %p4731_p7 = pnand %p4729_p6, %p4726_p5 }
 0x4ee   :  { %4734 = shalt.err (!%p4731_p7)
}
 0x4ef   :  { %3587 = dma.vmem_to_hbm [thread:$0]  %s3585_s8, 128, %s6216_s11, [#allocation5]   ;;  %4687 = vpow2.f32 %v3535_v43  ;;  %v2286_v1 = vsub.s32 6, %v5526_v54  ;;  %v2278_v15 = vsub.s32 4, %v5526_v54  ;;  %v2282_v16 = vsub.s32 5, %v5526_v54 }
 0x4f0   :  { %4689 = vpow2.f32 %v3533_v11  ;;  %s4764_s11 = smov [#allocation2]  }
 0x4f1   :  { %4691 = vpow2.f32 %v3537_v44  ;;  %v4686_v45 = vpop.eup %4685  ;;  %v2287_v3 = vrot.slane %v6164_v25, %v2286_v1  ;;  %v2279_v18 = vrot.slane %v6164_v25, %v2278_v15  ;;  %v2283_v17 = vrot.slane %v6164_v25, %v2282_v16  ;;  %s3574_s22 = sshll.u32 %s4764_s11, 4  ;;  %s3575_s22 = int_to_ptr.vmem [resolvable:$true] %s3574_s22 }
 0x4f2   :  { %v3545_v47 = vadd.f32 1.0, %v4686_v45  ;;  %s4735_s23 = scalar_lea.vmem %s3575_s22, 896  ;;  %p4740_p9 = scmp.lt.s32.totalorder %s3575_s22, %s3575_s22 }
 0x4f3   :  { %p4736_p8 = scmp.ne.s32.totalorder %s3575_s22, %s4735_s23  ;;  %p4741_p10 = scmp.lt.s32.totalorder %s4735_s23, %s4735_s23 }
 0x4f4   :  { %4693 = vrcp.f32 %v3545_v47 }
 0x4f5   :  { %p4742_p11 = por %p4741_p10, %p4740_p9 }
 0x4f7   :  { %p4743_p12 = pnand %p4742_p11, %p4736_p8 }
 0x4f9   :  { %v4688_v46 = vpop.eup %4687 }
 0x4fa   :  { %v4690_v48 = vpop.eup %4689  ;;  %v3547_v49 = vadd.f32 1.0, %v4688_v46 }
 0x4fb   :  { %v4692_v50 = vpop.eup %4691  ;;  %v3546_v51 = vadd.f32 1.0, %v4690_v48 }
 0x4fc   :  { %4695 = vrcp.f32 %v3547_v49  ;;  %v3548_v52 = vadd.f32 1.0, %v4692_v50 }
 0x4fd   :  { %4697 = vrcp.f32 %v3546_v51 }
 0x4fe   :  { %4699 = vrcp.f32 %v3548_v52  ;;  %v4694_v53 = vpop.eup %4693 }
 0x4ff   :  { %3559 = vst [vmem:[#allocation2] sm:$0xff] %v4694_v53 }
 0x501   :  { %v4050_v60 = vpop.f32.mrb[24].mxu1 }
 0x502   :  { %v4051_v61 = vpop.f32.mrb[25].mxu1 }
 0x503   :  { %v4052_v62 = vadd.f32 %v4051_v61, %v4050_v60  ;;  %v4053_v63 = vpop.f32.mrb[26].mxu1 }
 0x504   :  { %v4054_v0 = vpop.f32.mrb[27].mxu1 }
 0x505   :  { %v3479_v4 = vadd.f32 %v4052_v62, %v2287_v3 }
 0x506   :  { %v4696_v56 = vpop.eup %4695 }
 0x507   :  { %v4698_v58 = vpop.eup %4697  ;;  %3561 = vst [vmem:[#allocation2 + $0x10] sm:$0xff] %v4696_v56 }
 0x508   :  { %v4700_v59 = vpop.eup %4699  ;;  %3560 = vst [vmem:[#allocation2 + $0x8] sm:$0xff] %v4698_v58 }
 0x509   :  { %3562 = vst [vmem:[#allocation2 + $0x18] sm:$0xff] %v4700_v59 }
 0x525   :  { %v3518_v5 = vpop.f32.mrb[28].mxu1 }
 0x526   :  { %v3519_v8 = vadd.f32 %v3518_v5, %v3479_v4  ;;  %v3520_v9 = vpop.f32.mrb[29].mxu1 }
 0x527   :  { %v3521_v12 = vpop.f32.mrb[30].mxu1 }
 0x528   :  { %v3530_v13 = vsub.f32 0.0, %v3519_v8  ;;  %v3522_v2 = vpop.f32.mrb[31].mxu1 }
 0x52a   :  { %v3543_v21 = vmul.f32 1.442695, %v3530_v13 }
 0x52c   :  { %4701 = vpow2.f32 %v3543_v21 }
 0x536   :  { %v4702_v34 = vpop.eup %4701 }
 0x537   :  { %v3551_v14 = vadd.f32 1.0, %v4702_v34 }
 0x539   :  { %4703 = vrcp.f32 %v3551_v14 }
 0x543   :  { %v4704_v19 = vpop.eup %4703 }
 0x544   :  { %3565 = vst.msk [vmem:[#allocation2 + $0x30] sm:$0xff] %vm1252_vm0, %v4704_v19  ;;  %v3437_v20 = vpop.f32.mrb[12].mxu0 }
 0x545   :  { %v4066_v22 = vadd.f32 %v3437_v20, %v2279_v18  ;;  %v3439_v23 = vpop.f32.mrb[13].mxu0 }
 0x546   :  { %v4067_v24 = vadd.f32 %v3439_v23, %v2283_v17  ;;  %v3441_v26 = vpop.f32.mrb[14].mxu0 }
 0x547   :  { %v3528_v27 = vsub.f32 0.0, %v4066_v22  ;;  %v3442_v28 = vpop.f32.mrb[15].mxu0 }
 0x548   :  { %v3529_v29 = vsub.f32 0.0, %v4067_v24 }
 0x549   :  { %v3539_v30 = vmul.f32 1.442695, %v3528_v27 }
 0x54a   :  { %v3541_v31 = vmul.f32 1.442695, %v3529_v29 }
 0x54b   :  { %4705 = vpow2.f32 %v3539_v30 }
 0x54c   :  { %4707 = vpow2.f32 %v3541_v31 }
 0x555   :  { %v4706_v54 = vpop.eup %4705 }
 0x556   :  { %v4708_v6 = vpop.eup %4707  ;;  %v3549_v32 = vadd.f32 1.0, %v4706_v54 }
 0x557   :  { %v3550_v33 = vadd.f32 1.0, %v4708_v6 }
 0x558   :  { %4709 = vrcp.f32 %v3549_v32 }
 0x559   :  { %4711 = vrcp.f32 %v3550_v33 }
 0x562   :  { %v4710_v25 = vpop.eup %4709 }
 0x563   :  { %v4712_v35 = vpop.eup %4711  ;;  %3563 = vst [vmem:[#allocation2 + $0x20] sm:$0xff] %v4710_v25 }
 0x564   :  { %3564 = vst [vmem:[#allocation2 + $0x28] sm:$0xff] %v4712_v35 }
 0x565   :  { %4746 = shalt.err (!%p4743_p12)
}
 0x566   :  { %s4747_s25 = scalar_lea.hbm %s6215_s10, 896 }
 0x567   :  { %p4748_p13 = scmp.ne.s32.totalorder %s6215_s10, %s4747_s25  ;;  %p4751_p0 = scmp.lt.u32.totalorder %s4747_s25, %s6215_s10 }
 0x569   :  { %p4753_p1 = pnand %p4751_p0, %p4748_p13 }
 0x56b   :  { %4756 = shalt.err (!%p4753_p1)
}
 0x56c   :  { %3577 = dma.vmem_to_hbm [thread:$0]  %s3575_s22, 896, %s6215_s10, [#allocation3]  }
 0x56d   :  { %4757 = dma.done.wait [#allocation3], 896  }
 0x56e   :  { %4758 = vsyncadd [#allocation3], 4294966400 }
 0x56f   :  { %4759 = dma.done.wait [#allocation5], 128  }
 0x570   :  { %4760 = vsyncadd [#allocation5], 4294967168 }
 0x571   :  { %3594 = vsyncpa [#allocation3], 1 }
 0x572   :  { %3595 = vsyncpa [#allocation5], 1 }

</bundles_post_ra>
